<compile_context>
chip_gen: v7x
topology: tpu7x:2x2x1
jax: 0.10.0
libtpu: 0.0.40
codegen_flags: <defaults>
</compile_context>

<pallas_src>
import functools

import numpy as np
import jax
import jax.numpy as jnp
from jax import lax
from jax.experimental import pallas as pl
from jax.experimental.pallas import tpu as pltpu


# --------------------------------------------------------------------------
# Config (small, deterministic, consistent with BambaConfig fields used)
# --------------------------------------------------------------------------
CFG = dict(
    vocab_size=128,
    hidden_size=32,
    intermediate_size=64,          # MLP intermediate
    num_attention_heads=4,         # head_dim = 8
    num_key_value_heads=2,
    rms_norm_eps=1e-5,
    rope_theta=10000.0,
    layers_block_type=("mamba", "attention"),
    mamba_d_state=16,
    mamba_d_conv=4,
    mamba_expand=2,                # mamba intermediate = 64
    mamba_n_groups=1,
    mamba_n_heads=4,
    mamba_d_head=16,
)

_COMPILER_PARAMS = pltpu.CompilerParams(vmem_limit_bytes=32 * 1024 * 1024)


# --------------------------------------------------------------------------
# In-kernel helpers (values in, values out; all elementwise math in f32)
# --------------------------------------------------------------------------
def _rms(x, w, eps):
    var = jnp.mean(x * x, axis=-1, keepdims=True)
    return x * lax.rsqrt(var + eps) * w


def _silu(x):
    return x * jax.nn.sigmoid(x)


def _softplus(x):
    safe = jnp.minimum(x, 20.0)
    return jnp.where(x > 20.0, x, jnp.log(1.0 + jnp.exp(safe)))


def _mlp(h, w_gate_up_ref, w_down_ref, inter):
    # SiLU-gated MLP: (h @ Wgu) -> silu(gate)*up -> @ Wdown; bf16 MXU operands.
    gu = jnp.dot(h.astype(jnp.bfloat16), w_gate_up_ref[...],
                 preferred_element_type=jnp.float32)
    act = _silu(gu[:, :inter]) * gu[:, inter:]
    return jnp.dot(act.astype(jnp.bfloat16), w_down_ref[...],
                   preferred_element_type=jnp.float32)


# --------------------------------------------------------------------------
# Attention decoder block (values in/out, refs for the weights)
# --------------------------------------------------------------------------
def _attn_block(hidden, residual, vecs_ref, w_qkv_ref, w_o_ref, w_gu_ref,
                w_dn_ref, cos_q, sin_q, cos_k, sin_k, causal,
                *, H, nh, nkv, hd, eps, inter):
    q_size = nh * hd
    kv_size = nkv * hd
    grp = nh // nkv
    scale = hd ** -0.5

    # fused-add residual + input RMSNorm
    x1 = hidden + residual
    h = _rms(x1, vecs_ref[0:1, :H], eps)

    # one lane-dense (H,128) projection: [q|k|v | q_rot | k_rot | pad]
    big = jnp.dot(h.astype(jnp.bfloat16), w_qkv_ref[...],
                  preferred_element_type=jnp.float32)
    q_lin = big[:, :q_size]
    k_lin = big[:, q_size:q_size + kv_size]
    v = big[:, q_size + kv_size:q_size + 2 * kv_size]
    r0 = q_size + 2 * kv_size
    q_rot = big[:, r0:r0 + q_size]
    k_rot = big[:, r0 + q_size:r0 + q_size + kv_size]

    # neox RoPE: rotate_half folded into the weight, cos/sin elementwise only
    q = q_lin * cos_q + q_rot * sin_q
    k = k_lin * cos_k + k_rot * sin_k

    # per-head causal attention (GQA), accumulated in registers
    outs = []
    for hh in range(nh):
        g = hh // grp
        qh = q[:, hh * hd:(hh + 1) * hd].astype(jnp.bfloat16)
        kh = k[:, g * hd:(g + 1) * hd].astype(jnp.bfloat16)
        vh = v[:, g * hd:(g + 1) * hd].astype(jnp.bfloat16)
        s = lax.dot_general(qh, kh, (((1,), (1,)), ((), ())),
                            preferred_element_type=jnp.float32) * scale
        s = jnp.where(causal, s, -1e30)            # scores stay f32
        s = s - jnp.max(s, axis=-1, keepdims=True)
        e = jnp.exp(s)
        p = e * pl.reciprocal(jnp.sum(e, axis=-1, keepdims=True), approx=True)
        outs.append(jnp.dot(p.astype(jnp.bfloat16), vh,
                            preferred_element_type=jnp.float32))
    attn = jnp.concatenate(outs, axis=-1)

    o = jnp.dot(attn.astype(jnp.bfloat16), w_o_ref[...],
                preferred_element_type=jnp.float32)

    # fused-add residual + pre-FF RMSNorm + MLP
    x2 = o + x1
    h2 = _rms(x2, vecs_ref[1:2, :H], eps)
    return _mlp(h2, w_gu_ref, w_dn_ref, inter), x2


# --------------------------------------------------------------------------
# Mamba2 mixer decoder block
# --------------------------------------------------------------------------
def _mamba_block(hidden, residual, vecs_ref, w_in_ref, w_out_ref, w_gu_ref,
                 w_dn_ref, causal, causal_f, eye_f,
                 *, H, eps, inter, NH, HD, G, S, K, mI):
    conv_dim = mI + 2 * G * S
    T = hidden.shape[0]

    # fused-add residual + input RMSNorm
    x1 = hidden + residual
    h = _rms(x1, vecs_ref[0:1, :H], eps)

    # single fused in_proj: [gate | conv(x,B,C) | dt]  (one MXU push)
    proj = jnp.dot(h.astype(jnp.bfloat16), w_in_ref[...],
                   preferred_element_type=jnp.float32)
    gate = proj[:, :mI]
    hbc = proj[:, mI:mI + conv_dim]
    dt_raw = proj[:, mI + conv_dim:mI + conv_dim + NH]

    # causal depthwise conv1d (K taps) via XLU rolls + static row masks
    # tap k multiplies x[t - (K-1-k)]; conv taps live in vecs rows 8..8+K-1
    row1 = lax.broadcasted_iota(jnp.int32, (T, 1), 0)
    acc = hbc * vecs_ref[8 + K - 1:8 + K, :conv_dim]          # delta = 0 tap
    for k in range(K - 1):
        delta = K - 1 - k
        shifted = pltpu.roll(hbc, shift=delta, axis=0)        # out[t]=x[t-delta]
        shifted = jnp.where(row1 >= delta, shifted, 0.0)      # kill wraparound
        acc = acc + shifted * vecs_ref[8 + k:8 + k + 1, :conv_dim]
    hbc = _silu(acc + vecs_ref[2:3, :conv_dim])               # + conv bias

    xs = hbc[:, :mI]
    b_all = hbc[:, mI:mI + G * S]
    c_all = hbc[:, mI + G * S:]

    # dt and its inclusive cumulative sum, shared across heads (one matmul)
    dt = _softplus(dt_raw + vecs_ref[5:6, :NH])               # (T, NH)
    cums = jnp.dot(causal_f, dt, preferred_element_type=jnp.float32)

    # per-group C_t . B_s Gram matrices (bf16 MXU operands)
    gms = []
    for g in range(G):
        cg = c_all[:, g * S:(g + 1) * S].astype(jnp.bfloat16)
        bg = b_all[:, g * S:(g + 1) * S].astype(jnp.bfloat16)
        gms.append(lax.dot_general(cg, bg, (((1,), (1,)), ((), ())),
                                   preferred_element_type=jnp.float32))

    a_neg = vecs_ref[3:4, :NH]     # -exp(A_log)
    dvec = vecs_ref[4:5, :NH]      # D
    hpg = NH // G
    y_heads = []
    for hh in range(NH):
        a_h = a_neg[:, hh:hh + 1]
        d_h = dvec[:, hh:hh + 1]
        dt_col = dt[:, hh:hh + 1]
        cum_col = cums[:, hh:hh + 1]                                    # (T,1)
        cum_row = jnp.sum(eye_f * cum_col, axis=0, keepdims=True)       # (1,T)
        # seg[t,s] = sum_{s<r<=t} dt[r]; clamp keeps non-causal exp args at 0
        seg = jnp.maximum(cum_col - cum_row, 0.0)
        decay = jnp.where(causal, jnp.exp(a_h * seg), 0.0)
        xh = xs[:, hh * HD:(hh + 1) * HD]
        yh = jnp.dot((gms[hh // hpg] * decay).astype(jnp.bfloat16),
                     (xh * dt_col).astype(jnp.bfloat16),
                     preferred_element_type=jnp.float32) + d_h * xh
        y_heads.append(yh)
    y = jnp.concatenate(y_heads, axis=-1)                               # (T,mI)

    # gated RMSNorm (Mixer2RMSNormGated) + out_proj
    z = y * _silu(gate)
    var = jnp.mean(z * z, axis=-1, keepdims=True)
    z = z * lax.rsqrt(var + eps) * vecs_ref[6:7, :mI]
    out = jnp.dot(z.astype(jnp.bfloat16), w_out_ref[...],
                  preferred_element_type=jnp.float32)

    # fused-add residual + pre-FF RMSNorm + MLP
    x2 = out + x1
    h2 = _rms(x2, vecs_ref[1:2, :H], eps)
    return _mlp(h2, w_gu_ref, w_dn_ref, inter), x2


# --------------------------------------------------------------------------
# Whole-model kernel (one pallas_call for embed + all layers + final norm)
# --------------------------------------------------------------------------
def _bamba_kernel(ids_ref, rope_ref, embed_ref, *refs, layer_types, cfg):
    n_layers = len(layer_types)
    final_ln_ref = refs[5 * n_layers]
    out_ref = refs[5 * n_layers + 1]

    H = cfg['hidden_size']
    eps = cfg['rms_norm_eps']
    inter = cfg['intermediate_size']
    nh = cfg['num_attention_heads']
    nkv = cfg['num_key_value_heads']
    hd = H // nh
    NH, HD = cfg['mamba_n_heads'], cfg['mamba_d_head']
    G, S = cfg['mamba_n_groups'], cfg['mamba_d_state']
    K = cfg['mamba_d_conv']
    mI = cfg['mamba_expand'] * H

    T = ids_ref.shape[0]
    V = embed_ref.shape[0]

    # embedding gather as a one-hot MXU matmul (ids stay on-chip; no XLA
    # gather, no separate hidden-states HBM round trip)
    onehot = (ids_ref[...] ==
              lax.broadcasted_iota(jnp.int32, (T, V), 1)).astype(jnp.float32)
    hidden = jnp.dot(onehot, embed_ref[...], preferred_element_type=jnp.float32)
    residual = jnp.zeros_like(hidden)          # "residual is None" first layer

    # RoPE tables: one packed (T, 2*hd) operand, broadcast across heads here
    cos_hd = rope_ref[:, :hd]
    sin_hd = rope_ref[:, hd:2 * hd]
    cos_q = jnp.concatenate([cos_hd] * nh, axis=-1)
    sin_q = jnp.concatenate([sin_hd] * nh, axis=-1)
    cos_k = jnp.concatenate([cos_hd] * nkv, axis=-1)
    sin_k = jnp.concatenate([sin_hd] * nkv, axis=-1)

    # shared masks
    row = lax.broadcasted_iota(jnp.int32, (T, T), 0)
    col = lax.broadcasted_iota(jnp.int32, (T, T), 1)
    causal = col <= row
    causal_f = causal.astype(jnp.float32)
    eye_f = (row == col).astype(jnp.float32)

    for li, lt in enumerate(layer_types):
        vecs_ref, w0_ref, w1_ref, w2_ref, w3_ref = refs[5 * li:5 * li + 5]
        if lt == 'attention':
            hidden, residual = _attn_block(
                hidden, residual, vecs_ref, w0_ref, w1_ref, w2_ref, w3_ref,
                cos_q, sin_q, cos_k, sin_k, causal,
                H=H, nh=nh, nkv=nkv, hd=hd, eps=eps, inter=inter)
        else:
            hidden, residual = _mamba_block(
                hidden, residual, vecs_ref, w0_ref, w1_ref, w2_ref, w3_ref,
                causal, causal_f, eye_f,
                H=H, eps=eps, inter=inter, NH=NH, HD=HD, G=G, S=S, K=K, mI=mI)

    # final fused-add RMSNorm
    out_ref[...] = _rms(hidden + residual, final_ln_ref[...], eps)


def bamba_forward(params, input_ids, positions, cfg):
    T = input_ids.shape[0]
    H = cfg['hidden_size']
    ops = [input_ids.astype(jnp.int32).reshape(T, 1),
           _rope_table(positions, cfg),
           params['embed']]
    for lp in params['layers']:
        ops += [lp['vecs'], lp['w0'], lp['w1'], lp['w2'], lp['w3']]
    ops.append(params['final_ln'])

    kern = functools.partial(_bamba_kernel,
                             layer_types=tuple(cfg['layers_block_type']),
                             cfg=cfg)
    return pl.pallas_call(
        kern,
        out_shape=jax.ShapeDtypeStruct((T, H), jnp.float32),
        compiler_params=_COMPILER_PARAMS,
    )(*ops)


# --------------------------------------------------------------------------
# Host-side prep: packed RoPE table + rotate-half permutation folded into
# the QKV weight (no in-kernel reshapes/rolls for RoPE)
# --------------------------------------------------------------------------
def _rope_table(positions, cfg):
    hd = cfg['hidden_size'] // cfg['num_attention_heads']
    half = hd // 2
    inv_freq = 1.0 / (cfg['rope_theta'] ** (
        jnp.arange(half, dtype=jnp.float32) * 2.0 / hd))
    freqs = positions.astype(jnp.float32)[:, None] * inv_freq[None, :]
    cos = jnp.concatenate([jnp.cos(freqs), jnp.cos(freqs)], axis=-1)  # (T, hd)
    sin = jnp.concatenate([jnp.sin(freqs), jnp.sin(freqs)], axis=-1)
    return jnp.concatenate([cos, sin], axis=-1)                       # (T, 2hd)


def _rotate_half_perm(head_dim, n_heads):
    # P such that x @ P == neox rotate_half(x) on the flat (heads*hd) layout.
    half = head_dim // 2
    p = np.zeros((head_dim, head_dim), np.float32)
    for j in range(half):
        p[half + j, j] = -1.0      # out[:, j]       = -x[:, half + j]
        p[j, half + j] = 1.0       # out[:, half+j]  =  x[:, j]
    return jnp.asarray(np.kron(np.eye(n_heads, dtype=np.float32), p))


# --------------------------------------------------------------------------
# Deterministic parameter initialization (synthetic, not a checkpoint)
# --------------------------------------------------------------------------
def _init(key, shape, scale=0.02):
    return scale * jax.random.normal(key, shape, dtype=jnp.float32)


def make_params(cfg, key):
    keys = iter(jax.random.split(key, 64))
    H = cfg['hidden_size']
    I = cfg['intermediate_size']
    nh = cfg['num_attention_heads']
    nkv = cfg['num_key_value_heads']
    hd = H // nh
    q_size, kv_size = nh * hd, nkv * hd
    mI = cfg['mamba_expand'] * H
    G, S = cfg['mamba_n_groups'], cfg['mamba_d_state']
    NH = cfg['mamba_n_heads']
    K = cfg['mamba_d_conv']
    conv_dim = mI + 2 * G * S
    bf = jnp.bfloat16

    params = {
        'embed': _init(next(keys), (cfg['vocab_size'], H), 1.0),
        'final_ln': jnp.ones((1, H), jnp.float32),
        'layers': [],
    }
    pq = _rotate_half_perm(hd, nh)
    pk = _rotate_half_perm(hd, nkv)
    for lt in cfg['layers_block_type']:
        w_gu = _init(next(keys), (H, 2 * I)).astype(bf)
        w_dn = _init(next(keys), (I, H)).astype(bf)
        if lt == 'attention':
            w_qkv = _init(next(keys), (H, q_size + 2 * kv_size))
            w_q_rot = w_qkv[:, :q_size] @ pq
            w_k_rot = w_qkv[:, q_size:q_size + kv_size] @ pk
            total = q_size + 2 * kv_size + q_size + kv_size
            pieces = [w_qkv, w_q_rot, w_k_rot]
            padw = (-total) % 128
            if padw:
                pieces.append(jnp.zeros((H, padw), jnp.float32))
            w_big = jnp.concatenate(pieces, axis=-1)          # (H, 128)
            vecs = jnp.zeros((8, 128), jnp.float32)
            vecs = vecs.at[0, :H].set(1.0)                    # input_ln
            vecs = vecs.at[1, :H].set(1.0)                    # pre_ff_ln
            lp = dict(vecs=vecs,
                      w0=w_big.astype(bf),
                      w1=_init(next(keys), (q_size, H)).astype(bf),   # o_proj
                      w2=w_gu, w3=w_dn)
        else:
            w_in = _init(next(keys), (H, mI + conv_dim + NH))  # gate|conv|dt
            conv_w = _init(next(keys), (K, conv_dim), 0.2)
            conv_b = _init(next(keys), (1, conv_dim), 0.1)
            a_log = jnp.log(jnp.arange(1, NH + 1, dtype=jnp.float32))
            vecs = jnp.zeros((16, 128), jnp.float32)
            vecs = vecs.at[0, :H].set(1.0)                      # input_ln
            vecs = vecs.at[1, :H].set(1.0)                      # pre_ff_ln
            vecs = vecs.at[2, :conv_dim].set(conv_b[0])         # conv bias
            vecs = vecs.at[3, :NH].set(-jnp.exp(a_log))         # -exp(A_log)
            vecs = vecs.at[4, :NH].set(1.0)                     # D
            vecs = vecs.at[5, :NH].set(
                0.1 * jnp.arange(1, NH + 1, dtype=jnp.float32))  # dt_bias
            vecs = vecs.at[6, :mI].set(1.0)                      # gated norm w
            vecs = vecs.at[8:8 + K, :conv_dim].set(conv_w)       # conv taps
            lp = dict(vecs=vecs,
                      w0=w_in.astype(bf),
                      w1=_init(next(keys), (mI, H)).astype(bf),  # out_proj
                      w2=w_gu, w3=w_dn)
        params['layers'].append(lp)
    return params


# --------------------------------------------------------------------------
# Main
# --------------------------------------------------------------------------
if __name__ == "__main__":
    key = jax.random.PRNGKey(0)
    pkey, ikey = jax.random.split(key)
    params = make_params(CFG, pkey)

    T = 8
    input_ids = jax.random.randint(ikey, (T,), 0, CFG['vocab_size'],
                                   dtype=jnp.int32)
    positions = jnp.arange(T, dtype=jnp.int32)

    fwd = jax.jit(lambda p, ids, pos: bamba_forward(p, ids, pos, CFG))
    out = jax.block_until_ready(fwd(params, input_ids, positions))
    assert out.shape == (T, CFG['hidden_size'])
    assert bool(jnp.all(jnp.isfinite(out)))
    print("KERNEL_OK")
</pallas_src>

<mosaic_0001>
module attributes {stable_mosaic.version = 11 : i64} {
  func.func @_bamba_kernel(%arg0: memref<8x1xi32, #tpu.memory_space<vmem>>, %arg1: memref<8x16xf32, #tpu.memory_space<vmem>>, %arg2: memref<128x32xf32, #tpu.memory_space<vmem>>, %arg3: memref<16x128xf32, #tpu.memory_space<vmem>>, %arg4: memref<32x164xbf16, #tpu.memory_space<vmem>>, %arg5: memref<64x32xbf16, #tpu.memory_space<vmem>>, %arg6: memref<32x128xbf16, #tpu.memory_space<vmem>>, %arg7: memref<64x32xbf16, #tpu.memory_space<vmem>>, %arg8: memref<8x128xf32, #tpu.memory_space<vmem>>, %arg9: memref<32x128xbf16, #tpu.memory_space<vmem>>, %arg10: memref<32x32xbf16, #tpu.memory_space<vmem>>, %arg11: memref<32x128xbf16, #tpu.memory_space<vmem>>, %arg12: memref<64x32xbf16, #tpu.memory_space<vmem>>, %arg13: memref<1x32xf32, #tpu.memory_space<vmem>>, %arg14: memref<8x32xf32, #tpu.memory_space<vmem>>) attributes {dimension_semantics = [], scalar_prefetch = 0 : i64, scratch_operands = 0 : i64, tpu.core_type = #tpu.core_type<tc>} {
    %c0 = arith.constant 0 : index
    %c0_0 = arith.constant 0 : index
    %0 = vector.load %arg0[%c0, %c0_0] : memref<8x1xi32, #tpu.memory_space<vmem>>, vector<8x1xi32>
    %1 = tpu.iota {dimensions = array<i32: 1>} : vector<8x128xi32>
    %2 = vector.broadcast %0 : vector<8x1xi32> to vector<8x128xi32>
    %3 = arith.cmpi eq, %2, %1 : vector<8x128xi32>
    %4 = arith.extui %3 : vector<8x128xi1> to vector<8x128xi32>
    %5 = arith.sitofp %4 : vector<8x128xi32> to vector<8x128xf32>
    %c0_1 = arith.constant 0 : index
    %c0_2 = arith.constant 0 : index
    %6 = vector.load %arg2[%c0_1, %c0_2] : memref<128x32xf32, #tpu.memory_space<vmem>>, vector<128x32xf32>
    %cst = arith.constant dense<0.000000e+00> : vector<8x32xf32>
    %7 = tpu.matmul %5, %6, %cst {dimension_numbers = #tpu.dot_dimension_numbers<[1], [0], [0], [1], [0, 0, 1, 1], [], []>} : vector<8x128xf32>, vector<128x32xf32>, vector<8x32xf32> -> vector<8x32xf32>
    %cst_3 = arith.constant 0.000000e+00 : f32
    %8 = vector.broadcast %cst_3 : f32 to vector<8x32xf32>
    %c0_4 = arith.constant 0 : index
    %c0_5 = arith.constant 0 : index
    %9 = vector.load %arg1[%c0_4, %c0_5] : memref<8x16xf32, #tpu.memory_space<vmem>>, vector<8x8xf32>
    %c0_6 = arith.constant 0 : index
    %c8 = arith.constant 8 : index
    %10 = vector.load %arg1[%c0_6, %c8] : memref<8x16xf32, #tpu.memory_space<vmem>>, vector<8x8xf32>
    %11 = tpu.concatenate %9, %9, %9, %9 in 1 : vector<8x8xf32>, vector<8x8xf32>, vector<8x8xf32>, vector<8x8xf32> -> vector<8x32xf32>
    %12 = tpu.concatenate %10, %10, %10, %10 in 1 : vector<8x8xf32>, vector<8x8xf32>, vector<8x8xf32>, vector<8x8xf32> -> vector<8x32xf32>
    %13 = tpu.concatenate %9, %9 in 1 : vector<8x8xf32>, vector<8x8xf32> -> vector<8x16xf32>
    %14 = tpu.concatenate %10, %10 in 1 : vector<8x8xf32>, vector<8x8xf32> -> vector<8x16xf32>
    %15 = tpu.iota {dimensions = array<i32: 0>} : vector<8x8xi32>
    %16 = tpu.iota {dimensions = array<i32: 1>} : vector<8x8xi32>
    %17 = arith.cmpi sle, %16, %15 : vector<8x8xi32>
    %18 = arith.extui %17 : vector<8x8xi1> to vector<8x8xi32>
    %19 = arith.sitofp %18 : vector<8x8xi32> to vector<8x8xf32>
    %20 = arith.cmpi eq, %15, %16 : vector<8x8xi32>
    %21 = arith.extui %20 : vector<8x8xi1> to vector<8x8xi32>
    %22 = arith.sitofp %21 : vector<8x8xi32> to vector<8x8xf32>
    %23 = arith.addf %7, %8 : vector<8x32xf32>
    %c0_7 = arith.constant 0 : index
    %c0_8 = arith.constant 0 : index
    %24 = vector.load %arg3[%c0_7, %c0_8] : memref<16x128xf32, #tpu.memory_space<vmem>>, vector<1x32xf32>
    %25 = arith.mulf %23, %23 : vector<8x32xf32>
    %cst_9 = arith.constant dense<0.000000e+00> : vector<8xf32>
    %26 = vector.multi_reduction <add>, %25, %cst_9 [1] : vector<8x32xf32> to vector<8xf32>
    %27 = vector.shape_cast %26 : vector<8xf32> to vector<8x1xf32>
    %cst_10 = arith.constant 3.200000e+01 : f32
    %28 = vector.broadcast %cst_10 : f32 to vector<8x1xf32>
    %29 = arith.divf %27, %28 : vector<8x1xf32>
    %cst_11 = arith.constant 9.99999974E-6 : f32
    %30 = vector.broadcast %cst_11 : f32 to vector<8x1xf32>
    %31 = arith.addf %29, %30 : vector<8x1xf32>
    %32 = math.rsqrt %31 : vector<8x1xf32>
    %33 = vector.broadcast %32 : vector<8x1xf32> to vector<8x32xf32>
    %34 = arith.mulf %23, %33 : vector<8x32xf32>
    %35 = vector.broadcast %24 : vector<1x32xf32> to vector<8x32xf32>
    %36 = arith.mulf %34, %35 : vector<8x32xf32>
    %37 = arith.truncf %36 : vector<8x32xf32> to vector<8x32xbf16>
    %c0_12 = arith.constant 0 : index
    %c0_13 = arith.constant 0 : index
    %38 = vector.load %arg4[%c0_12, %c0_13] : memref<32x164xbf16, #tpu.memory_space<vmem>>, vector<32x164xbf16>
    %cst_14 = arith.constant dense<0.000000e+00> : vector<8x164xf32>
    %39 = tpu.matmul %37, %38, %cst_14 {dimension_numbers = #tpu.dot_dimension_numbers<[1], [0], [0], [1], [0, 0, 1, 1], [], []>} : vector<8x32xbf16>, vector<32x164xbf16>, vector<8x164xf32> -> vector<8x164xf32>
    %40 = vector.extract_strided_slice %39 {offsets = [0, 0], sizes = [8, 64], strides = [1, 1]} : vector<8x164xf32> to vector<8x64xf32>
    %41 = vector.extract_strided_slice %39 {offsets = [0, 64], sizes = [8, 96], strides = [1, 1]} : vector<8x164xf32> to vector<8x96xf32>
    %42 = vector.extract_strided_slice %39 {offsets = [0, 160], sizes = [8, 4], strides = [1, 1]} : vector<8x164xf32> to vector<8x4xf32>
    %43 = tpu.iota {dimensions = array<i32: 0>} : vector<8x1xi32>
    %c11 = arith.constant 11 : index
    %c0_15 = arith.constant 0 : index
    %44 = vector.load %arg3[%c11, %c0_15] : memref<16x128xf32, #tpu.memory_space<vmem>>, vector<1x96xf32>
    %45 = vector.broadcast %44 : vector<1x96xf32> to vector<8x96xf32>
    %46 = arith.mulf %41, %45 : vector<8x96xf32>
    %c3_i32 = arith.constant 3 : i32
    %47 = tpu.dynamic_rotate %41 by %c3_i32 dim 0 : vector<8x96xf32>, i32 -> vector<8x96xf32>
    %c3_i32_16 = arith.constant 3 : i32
    %48 = vector.broadcast %c3_i32_16 : i32 to vector<8x1xi32>
    %49 = arith.cmpi sge, %43, %48 : vector<8x1xi32>
    %cst_17 = arith.constant 0.000000e+00 : f32
    %50 = vector.shape_cast %49 : vector<8x1xi1> to vector<8x1xi1>
    %51 = vector.broadcast %50 : vector<8x1xi1> to vector<8x96xi1>
    %52 = vector.broadcast %cst_17 : f32 to vector<8x96xf32>
    %53 = arith.select %51, %47, %52 : vector<8x96xi1>, vector<8x96xf32>
    %c8_18 = arith.constant 8 : index
    %c0_19 = arith.constant 0 : index
    %54 = vector.load %arg3[%c8_18, %c0_19] : memref<16x128xf32, #tpu.memory_space<vmem>>, vector<1x96xf32>
    %55 = vector.broadcast %54 : vector<1x96xf32> to vector<8x96xf32>
    %56 = arith.mulf %53, %55 : vector<8x96xf32>
    %57 = arith.addf %46, %56 : vector<8x96xf32>
    %c2_i32 = arith.constant 2 : i32
    %58 = tpu.dynamic_rotate %41 by %c2_i32 dim 0 : vector<8x96xf32>, i32 -> vector<8x96xf32>
    %c2_i32_20 = arith.constant 2 : i32
    %59 = vector.broadcast %c2_i32_20 : i32 to vector<8x1xi32>
    %60 = arith.cmpi sge, %43, %59 : vector<8x1xi32>
    %cst_21 = arith.constant 0.000000e+00 : f32
    %61 = vector.shape_cast %60 : vector<8x1xi1> to vector<8x1xi1>
    %62 = vector.broadcast %61 : vector<8x1xi1> to vector<8x96xi1>
    %63 = vector.broadcast %cst_21 : f32 to vector<8x96xf32>
    %64 = arith.select %62, %58, %63 : vector<8x96xi1>, vector<8x96xf32>
    %c9 = arith.constant 9 : index
    %c0_22 = arith.constant 0 : index
    %65 = vector.load %arg3[%c9, %c0_22] : memref<16x128xf32, #tpu.memory_space<vmem>>, vector<1x96xf32>
    %66 = vector.broadcast %65 : vector<1x96xf32> to vector<8x96xf32>
    %67 = arith.mulf %64, %66 : vector<8x96xf32>
    %68 = arith.addf %57, %67 : vector<8x96xf32>
    %c1_i32 = arith.constant 1 : i32
    %69 = tpu.dynamic_rotate %41 by %c1_i32 dim 0 : vector<8x96xf32>, i32 -> vector<8x96xf32>
    %c1_i32_23 = arith.constant 1 : i32
    %70 = vector.broadcast %c1_i32_23 : i32 to vector<8x1xi32>
    %71 = arith.cmpi sge, %43, %70 : vector<8x1xi32>
    %cst_24 = arith.constant 0.000000e+00 : f32
    %72 = vector.shape_cast %71 : vector<8x1xi1> to vector<8x1xi1>
    %73 = vector.broadcast %72 : vector<8x1xi1> to vector<8x96xi1>
    %74 = vector.broadcast %cst_24 : f32 to vector<8x96xf32>
    %75 = arith.select %73, %69, %74 : vector<8x96xi1>, vector<8x96xf32>
    %c10 = arith.constant 10 : index
    %c0_25 = arith.constant 0 : index
    %76 = vector.load %arg3[%c10, %c0_25] : memref<16x128xf32, #tpu.memory_space<vmem>>, vector<1x96xf32>
    %77 = vector.broadcast %76 : vector<1x96xf32> to vector<8x96xf32>
    %78 = arith.mulf %75, %77 : vector<8x96xf32>
    %79 = arith.addf %68, %78 : vector<8x96xf32>
    %c2 = arith.constant 2 : index
    %c0_26 = arith.constant 0 : index
    %80 = vector.load %arg3[%c2, %c0_26] : memref<16x128xf32, #tpu.memory_space<vmem>>, vector<1x96xf32>
    %81 = vector.broadcast %80 : vector<1x96xf32> to vector<8x96xf32>
    %82 = arith.addf %79, %81 : vector<8x96xf32>
    %83 = arith.negf %82 : vector<8x96xf32>
    %84 = math.exp %83 : vector<8x96xf32>
    %cst_27 = arith.constant 1.000000e+00 : f32
    %85 = vector.broadcast %cst_27 : f32 to vector<8x96xf32>
    %86 = arith.addf %85, %84 : vector<8x96xf32>
    %87 = arith.divf %85, %86 : vector<8x96xf32>
    %88 = arith.mulf %82, %87 : vector<8x96xf32>
    %89 = vector.extract_strided_slice %88 {offsets = [0, 0], sizes = [8, 64], strides = [1, 1]} : vector<8x96xf32> to vector<8x64xf32>
    %90 = vector.extract_strided_slice %88 {offsets = [0, 64], sizes = [8, 16], strides = [1, 1]} : vector<8x96xf32> to vector<8x16xf32>
    %91 = vector.extract_strided_slice %88 {offsets = [0, 80], sizes = [8, 16], strides = [1, 1]} : vector<8x96xf32> to vector<8x16xf32>
    %c5 = arith.constant 5 : index
    %c0_28 = arith.constant 0 : index
    %92 = vector.load %arg3[%c5, %c0_28] : memref<16x128xf32, #tpu.memory_space<vmem>>, vector<1x4xf32>
    %93 = vector.broadcast %92 : vector<1x4xf32> to vector<8x4xf32>
    %94 = arith.addf %42, %93 : vector<8x4xf32>
    %cst_29 = arith.constant 2.000000e+01 : f32
    %95 = vector.broadcast %cst_29 : f32 to vector<8x4xf32>
    %96 = arith.minimumf %94, %95 : vector<8x4xf32>
    %cst_30 = arith.constant 2.000000e+01 : f32
    %97 = vector.broadcast %cst_30 : f32 to vector<8x4xf32>
    %98 = arith.cmpf ogt, %94, %97 : vector<8x4xf32>
    %99 = math.exp %96 : vector<8x4xf32>
    %cst_31 = arith.constant 1.000000e+00 : f32
    %100 = vector.broadcast %cst_31 : f32 to vector<8x4xf32>
    %101 = arith.addf %100, %99 : vector<8x4xf32>
    %102 = math.log %101 : vector<8x4xf32>
    %103 = arith.select %98, %94, %102 : vector<8x4xi1>, vector<8x4xf32>
    %cst_32 = arith.constant dense<0.000000e+00> : vector<8x4xf32>
    %104 = tpu.matmul %19, %103, %cst_32 {dimension_numbers = #tpu.dot_dimension_numbers<[1], [0], [0], [1], [0, 0, 1, 1], [], []>} : vector<8x8xf32>, vector<8x4xf32>, vector<8x4xf32> -> vector<8x4xf32>
    %105 = arith.truncf %91 : vector<8x16xf32> to vector<8x16xbf16>
    %106 = arith.truncf %90 : vector<8x16xf32> to vector<8x16xbf16>
    %cst_33 = arith.constant dense<0.000000e+00> : vector<8x8xf32>
    %107 = tpu.matmul %105, %106, %cst_33 {dimension_numbers = #tpu.dot_dimension_numbers<[1], [1], [0], [0], [0, 0, 1, 0], [], []>} : vector<8x16xbf16>, vector<8x16xbf16>, vector<8x8xf32> -> vector<8x8xf32>
    %c3 = arith.constant 3 : index
    %c0_34 = arith.constant 0 : index
    %108 = vector.load %arg3[%c3, %c0_34] : memref<16x128xf32, #tpu.memory_space<vmem>>, vector<1x4xf32>
    %c4 = arith.constant 4 : index
    %c0_35 = arith.constant 0 : index
    %109 = vector.load %arg3[%c4, %c0_35] : memref<16x128xf32, #tpu.memory_space<vmem>>, vector<1x4xf32>
    %110 = vector.extract_strided_slice %108 {offsets = [0, 0], sizes = [1, 1], strides = [1, 1]} : vector<1x4xf32> to vector<1x1xf32>
    %111 = vector.extract_strided_slice %109 {offsets = [0, 0], sizes = [1, 1], strides = [1, 1]} : vector<1x4xf32> to vector<1x1xf32>
    %112 = vector.extract_strided_slice %103 {offsets = [0, 0], sizes = [8, 1], strides = [1, 1]} : vector<8x4xf32> to vector<8x1xf32>
    %113 = vector.extract_strided_slice %104 {offsets = [0, 0], sizes = [8, 1], strides = [1, 1]} : vector<8x4xf32> to vector<8x1xf32>
    %114 = vector.broadcast %113 : vector<8x1xf32> to vector<8x8xf32>
    %115 = arith.mulf %22, %114 : vector<8x8xf32>
    %cst_36 = arith.constant dense<0.000000e+00> : vector<8xf32>
    %116 = vector.multi_reduction <add>, %115, %cst_36 [0] : vector<8x8xf32> to vector<8xf32>
    %117 = vector.shape_cast %116 : vector<8xf32> to vector<1x8xf32>
    %118 = vector.broadcast %113 : vector<8x1xf32> to vector<8x8xf32>
    %119 = vector.broadcast %117 : vector<1x8xf32> to vector<8x8xf32>
    %120 = arith.subf %118, %119 : vector<8x8xf32>
    %cst_37 = arith.constant 0.000000e+00 : f32
    %121 = vector.broadcast %cst_37 : f32 to vector<8x8xf32>
    %122 = arith.maximumf %120, %121 : vector<8x8xf32>
    %123 = vector.broadcast %110 : vector<1x1xf32> to vector<8x8xf32>
    %124 = arith.mulf %123, %122 : vector<8x8xf32>
    %125 = math.exp %124 : vector<8x8xf32>
    %cst_38 = arith.constant 0.000000e+00 : f32
    %126 = vector.broadcast %cst_38 : f32 to vector<8x8xf32>
    %127 = arith.select %17, %125, %126 : vector<8x8xi1>, vector<8x8xf32>
    %128 = vector.extract_strided_slice %89 {offsets = [0, 0], sizes = [8, 16], strides = [1, 1]} : vector<8x64xf32> to vector<8x16xf32>
    %129 = arith.mulf %107, %127 : vector<8x8xf32>
    %130 = arith.truncf %129 : vector<8x8xf32> to vector<8x8xbf16>
    %131 = vector.broadcast %112 : vector<8x1xf32> to vector<8x16xf32>
    %132 = arith.mulf %128, %131 : vector<8x16xf32>
    %133 = arith.truncf %132 : vector<8x16xf32> to vector<8x16xbf16>
    %cst_39 = arith.constant dense<0.000000e+00> : vector<8x16xf32>
    %134 = tpu.matmul %130, %133, %cst_39 {dimension_numbers = #tpu.dot_dimension_numbers<[1], [0], [0], [1], [0, 0, 1, 1], [], []>} : vector<8x8xbf16>, vector<8x16xbf16>, vector<8x16xf32> -> vector<8x16xf32>
    %135 = vector.broadcast %111 : vector<1x1xf32> to vector<8x16xf32>
    %136 = arith.mulf %135, %128 : vector<8x16xf32>
    %137 = arith.addf %134, %136 : vector<8x16xf32>
    %138 = vector.extract_strided_slice %108 {offsets = [0, 1], sizes = [1, 1], strides = [1, 1]} : vector<1x4xf32> to vector<1x1xf32>
    %139 = vector.extract_strided_slice %109 {offsets = [0, 1], sizes = [1, 1], strides = [1, 1]} : vector<1x4xf32> to vector<1x1xf32>
    %140 = vector.extract_strided_slice %103 {offsets = [0, 1], sizes = [8, 1], strides = [1, 1]} : vector<8x4xf32> to vector<8x1xf32>
    %141 = vector.extract_strided_slice %104 {offsets = [0, 1], sizes = [8, 1], strides = [1, 1]} : vector<8x4xf32> to vector<8x1xf32>
    %142 = vector.broadcast %141 : vector<8x1xf32> to vector<8x8xf32>
    %143 = arith.mulf %22, %142 : vector<8x8xf32>
    %cst_40 = arith.constant dense<0.000000e+00> : vector<8xf32>
    %144 = vector.multi_reduction <add>, %143, %cst_40 [0] : vector<8x8xf32> to vector<8xf32>
    %145 = vector.shape_cast %144 : vector<8xf32> to vector<1x8xf32>
    %146 = vector.broadcast %141 : vector<8x1xf32> to vector<8x8xf32>
    %147 = vector.broadcast %145 : vector<1x8xf32> to vector<8x8xf32>
    %148 = arith.subf %146, %147 : vector<8x8xf32>
    %cst_41 = arith.constant 0.000000e+00 : f32
    %149 = vector.broadcast %cst_41 : f32 to vector<8x8xf32>
    %150 = arith.maximumf %148, %149 : vector<8x8xf32>
    %151 = vector.broadcast %138 : vector<1x1xf32> to vector<8x8xf32>
    %152 = arith.mulf %151, %150 : vector<8x8xf32>
    %153 = math.exp %152 : vector<8x8xf32>
    %cst_42 = arith.constant 0.000000e+00 : f32
    %154 = vector.broadcast %cst_42 : f32 to vector<8x8xf32>
    %155 = arith.select %17, %153, %154 : vector<8x8xi1>, vector<8x8xf32>
    %156 = vector.extract_strided_slice %89 {offsets = [0, 16], sizes = [8, 16], strides = [1, 1]} : vector<8x64xf32> to vector<8x16xf32>
    %157 = arith.mulf %107, %155 : vector<8x8xf32>
    %158 = arith.truncf %157 : vector<8x8xf32> to vector<8x8xbf16>
    %159 = vector.broadcast %140 : vector<8x1xf32> to vector<8x16xf32>
    %160 = arith.mulf %156, %159 : vector<8x16xf32>
    %161 = arith.truncf %160 : vector<8x16xf32> to vector<8x16xbf16>
    %cst_43 = arith.constant dense<0.000000e+00> : vector<8x16xf32>
    %162 = tpu.matmul %158, %161, %cst_43 {dimension_numbers = #tpu.dot_dimension_numbers<[1], [0], [0], [1], [0, 0, 1, 1], [], []>} : vector<8x8xbf16>, vector<8x16xbf16>, vector<8x16xf32> -> vector<8x16xf32>
    %163 = vector.broadcast %139 : vector<1x1xf32> to vector<8x16xf32>
    %164 = arith.mulf %163, %156 : vector<8x16xf32>
    %165 = arith.addf %162, %164 : vector<8x16xf32>
    %166 = vector.extract_strided_slice %108 {offsets = [0, 2], sizes = [1, 1], strides = [1, 1]} : vector<1x4xf32> to vector<1x1xf32>
    %167 = vector.extract_strided_slice %109 {offsets = [0, 2], sizes = [1, 1], strides = [1, 1]} : vector<1x4xf32> to vector<1x1xf32>
    %168 = vector.extract_strided_slice %103 {offsets = [0, 2], sizes = [8, 1], strides = [1, 1]} : vector<8x4xf32> to vector<8x1xf32>
    %169 = vector.extract_strided_slice %104 {offsets = [0, 2], sizes = [8, 1], strides = [1, 1]} : vector<8x4xf32> to vector<8x1xf32>
    %170 = vector.broadcast %169 : vector<8x1xf32> to vector<8x8xf32>
    %171 = arith.mulf %22, %170 : vector<8x8xf32>
    %cst_44 = arith.constant dense<0.000000e+00> : vector<8xf32>
    %172 = vector.multi_reduction <add>, %171, %cst_44 [0] : vector<8x8xf32> to vector<8xf32>
    %173 = vector.shape_cast %172 : vector<8xf32> to vector<1x8xf32>
    %174 = vector.broadcast %169 : vector<8x1xf32> to vector<8x8xf32>
    %175 = vector.broadcast %173 : vector<1x8xf32> to vector<8x8xf32>
    %176 = arith.subf %174, %175 : vector<8x8xf32>
    %cst_45 = arith.constant 0.000000e+00 : f32
    %177 = vector.broadcast %cst_45 : f32 to vector<8x8xf32>
    %178 = arith.maximumf %176, %177 : vector<8x8xf32>
    %179 = vector.broadcast %166 : vector<1x1xf32> to vector<8x8xf32>
    %180 = arith.mulf %179, %178 : vector<8x8xf32>
    %181 = math.exp %180 : vector<8x8xf32>
    %cst_46 = arith.constant 0.000000e+00 : f32
    %182 = vector.broadcast %cst_46 : f32 to vector<8x8xf32>
    %183 = arith.select %17, %181, %182 : vector<8x8xi1>, vector<8x8xf32>
    %184 = vector.extract_strided_slice %89 {offsets = [0, 32], sizes = [8, 16], strides = [1, 1]} : vector<8x64xf32> to vector<8x16xf32>
    %185 = arith.mulf %107, %183 : vector<8x8xf32>
    %186 = arith.truncf %185 : vector<8x8xf32> to vector<8x8xbf16>
    %187 = vector.broadcast %168 : vector<8x1xf32> to vector<8x16xf32>
    %188 = arith.mulf %184, %187 : vector<8x16xf32>
    %189 = arith.truncf %188 : vector<8x16xf32> to vector<8x16xbf16>
    %cst_47 = arith.constant dense<0.000000e+00> : vector<8x16xf32>
    %190 = tpu.matmul %186, %189, %cst_47 {dimension_numbers = #tpu.dot_dimension_numbers<[1], [0], [0], [1], [0, 0, 1, 1], [], []>} : vector<8x8xbf16>, vector<8x16xbf16>, vector<8x16xf32> -> vector<8x16xf32>
    %191 = vector.broadcast %167 : vector<1x1xf32> to vector<8x16xf32>
    %192 = arith.mulf %191, %184 : vector<8x16xf32>
    %193 = arith.addf %190, %192 : vector<8x16xf32>
    %194 = vector.extract_strided_slice %108 {offsets = [0, 3], sizes = [1, 1], strides = [1, 1]} : vector<1x4xf32> to vector<1x1xf32>
    %195 = vector.extract_strided_slice %109 {offsets = [0, 3], sizes = [1, 1], strides = [1, 1]} : vector<1x4xf32> to vector<1x1xf32>
    %196 = vector.extract_strided_slice %103 {offsets = [0, 3], sizes = [8, 1], strides = [1, 1]} : vector<8x4xf32> to vector<8x1xf32>
    %197 = vector.extract_strided_slice %104 {offsets = [0, 3], sizes = [8, 1], strides = [1, 1]} : vector<8x4xf32> to vector<8x1xf32>
    %198 = vector.broadcast %197 : vector<8x1xf32> to vector<8x8xf32>
    %199 = arith.mulf %22, %198 : vector<8x8xf32>
    %cst_48 = arith.constant dense<0.000000e+00> : vector<8xf32>
    %200 = vector.multi_reduction <add>, %199, %cst_48 [0] : vector<8x8xf32> to vector<8xf32>
    %201 = vector.shape_cast %200 : vector<8xf32> to vector<1x8xf32>
    %202 = vector.broadcast %197 : vector<8x1xf32> to vector<8x8xf32>
    %203 = vector.broadcast %201 : vector<1x8xf32> to vector<8x8xf32>
    %204 = arith.subf %202, %203 : vector<8x8xf32>
    %cst_49 = arith.constant 0.000000e+00 : f32
    %205 = vector.broadcast %cst_49 : f32 to vector<8x8xf32>
    %206 = arith.maximumf %204, %205 : vector<8x8xf32>
    %207 = vector.broadcast %194 : vector<1x1xf32> to vector<8x8xf32>
    %208 = arith.mulf %207, %206 : vector<8x8xf32>
    %209 = math.exp %208 : vector<8x8xf32>
    %cst_50 = arith.constant 0.000000e+00 : f32
    %210 = vector.broadcast %cst_50 : f32 to vector<8x8xf32>
    %211 = arith.select %17, %209, %210 : vector<8x8xi1>, vector<8x8xf32>
    %212 = vector.extract_strided_slice %89 {offsets = [0, 48], sizes = [8, 16], strides = [1, 1]} : vector<8x64xf32> to vector<8x16xf32>
    %213 = arith.mulf %107, %211 : vector<8x8xf32>
    %214 = arith.truncf %213 : vector<8x8xf32> to vector<8x8xbf16>
    %215 = vector.broadcast %196 : vector<8x1xf32> to vector<8x16xf32>
    %216 = arith.mulf %212, %215 : vector<8x16xf32>
    %217 = arith.truncf %216 : vector<8x16xf32> to vector<8x16xbf16>
    %cst_51 = arith.constant dense<0.000000e+00> : vector<8x16xf32>
    %218 = tpu.matmul %214, %217, %cst_51 {dimension_numbers = #tpu.dot_dimension_numbers<[1], [0], [0], [1], [0, 0, 1, 1], [], []>} : vector<8x8xbf16>, vector<8x16xbf16>, vector<8x16xf32> -> vector<8x16xf32>
    %219 = vector.broadcast %195 : vector<1x1xf32> to vector<8x16xf32>
    %220 = arith.mulf %219, %212 : vector<8x16xf32>
    %221 = arith.addf %218, %220 : vector<8x16xf32>
    %222 = tpu.concatenate %137, %165, %193, %221 in 1 : vector<8x16xf32>, vector<8x16xf32>, vector<8x16xf32>, vector<8x16xf32> -> vector<8x64xf32>
    %223 = arith.negf %40 : vector<8x64xf32>
    %224 = math.exp %223 : vector<8x64xf32>
    %cst_52 = arith.constant 1.000000e+00 : f32
    %225 = vector.broadcast %cst_52 : f32 to vector<8x64xf32>
    %226 = arith.addf %225, %224 : vector<8x64xf32>
    %227 = arith.divf %225, %226 : vector<8x64xf32>
    %228 = arith.mulf %40, %227 : vector<8x64xf32>
    %229 = arith.mulf %222, %228 : vector<8x64xf32>
    %230 = arith.mulf %229, %229 : vector<8x64xf32>
    %cst_53 = arith.constant dense<0.000000e+00> : vector<8xf32>
    %231 = vector.multi_reduction <add>, %230, %cst_53 [1] : vector<8x64xf32> to vector<8xf32>
    %232 = vector.shape_cast %231 : vector<8xf32> to vector<8x1xf32>
    %cst_54 = arith.constant 6.400000e+01 : f32
    %233 = vector.broadcast %cst_54 : f32 to vector<8x1xf32>
    %234 = arith.divf %232, %233 : vector<8x1xf32>
    %cst_55 = arith.constant 9.99999974E-6 : f32
    %235 = vector.broadcast %cst_55 : f32 to vector<8x1xf32>
    %236 = arith.addf %234, %235 : vector<8x1xf32>
    %237 = math.rsqrt %236 : vector<8x1xf32>
    %238 = vector.broadcast %237 : vector<8x1xf32> to vector<8x64xf32>
    %239 = arith.mulf %229, %238 : vector<8x64xf32>
    %c6 = arith.constant 6 : index
    %c0_56 = arith.constant 0 : index
    %240 = vector.load %arg3[%c6, %c0_56] : memref<16x128xf32, #tpu.memory_space<vmem>>, vector<1x64xf32>
    %241 = vector.broadcast %240 : vector<1x64xf32> to vector<8x64xf32>
    %242 = arith.mulf %239, %241 : vector<8x64xf32>
    %243 = arith.truncf %242 : vector<8x64xf32> to vector<8x64xbf16>
    %c0_57 = arith.constant 0 : index
    %c0_58 = arith.constant 0 : index
    %244 = vector.load %arg5[%c0_57, %c0_58] : memref<64x32xbf16, #tpu.memory_space<vmem>>, vector<64x32xbf16>
    %cst_59 = arith.constant dense<0.000000e+00> : vector<8x32xf32>
    %245 = tpu.matmul %243, %244, %cst_59 {dimension_numbers = #tpu.dot_dimension_numbers<[1], [0], [0], [1], [0, 0, 1, 1], [], []>} : vector<8x64xbf16>, vector<64x32xbf16>, vector<8x32xf32> -> vector<8x32xf32>
    %246 = arith.addf %245, %23 : vector<8x32xf32>
    %c1 = arith.constant 1 : index
    %c0_60 = arith.constant 0 : index
    %247 = vector.load %arg3[%c1, %c0_60] : memref<16x128xf32, #tpu.memory_space<vmem>>, vector<1x32xf32>
    %248 = arith.mulf %246, %246 : vector<8x32xf32>
    %cst_61 = arith.constant dense<0.000000e+00> : vector<8xf32>
    %249 = vector.multi_reduction <add>, %248, %cst_61 [1] : vector<8x32xf32> to vector<8xf32>
    %250 = vector.shape_cast %249 : vector<8xf32> to vector<8x1xf32>
    %cst_62 = arith.constant 3.200000e+01 : f32
    %251 = vector.broadcast %cst_62 : f32 to vector<8x1xf32>
    %252 = arith.divf %250, %251 : vector<8x1xf32>
    %cst_63 = arith.constant 9.99999974E-6 : f32
    %253 = vector.broadcast %cst_63 : f32 to vector<8x1xf32>
    %254 = arith.addf %252, %253 : vector<8x1xf32>
    %255 = math.rsqrt %254 : vector<8x1xf32>
    %256 = vector.broadcast %255 : vector<8x1xf32> to vector<8x32xf32>
    %257 = arith.mulf %246, %256 : vector<8x32xf32>
    %258 = vector.broadcast %247 : vector<1x32xf32> to vector<8x32xf32>
    %259 = arith.mulf %257, %258 : vector<8x32xf32>
    %260 = arith.truncf %259 : vector<8x32xf32> to vector<8x32xbf16>
    %c0_64 = arith.constant 0 : index
    %c0_65 = arith.constant 0 : index
    %261 = vector.load %arg6[%c0_64, %c0_65] : memref<32x128xbf16, #tpu.memory_space<vmem>>, vector<32x128xbf16>
    %cst_66 = arith.constant dense<0.000000e+00> : vector<8x128xf32>
    %262 = tpu.matmul %260, %261, %cst_66 {dimension_numbers = #tpu.dot_dimension_numbers<[1], [0], [0], [1], [0, 0, 1, 1], [], []>} : vector<8x32xbf16>, vector<32x128xbf16>, vector<8x128xf32> -> vector<8x128xf32>
    %263 = vector.extract_strided_slice %262 {offsets = [0, 0], sizes = [8, 64], strides = [1, 1]} : vector<8x128xf32> to vector<8x64xf32>
    %264 = arith.negf %263 : vector<8x64xf32>
    %265 = math.exp %264 : vector<8x64xf32>
    %cst_67 = arith.constant 1.000000e+00 : f32
    %266 = vector.broadcast %cst_67 : f32 to vector<8x64xf32>
    %267 = arith.addf %266, %265 : vector<8x64xf32>
    %268 = arith.divf %266, %267 : vector<8x64xf32>
    %269 = arith.mulf %263, %268 : vector<8x64xf32>
    %270 = vector.extract_strided_slice %262 {offsets = [0, 64], sizes = [8, 64], strides = [1, 1]} : vector<8x128xf32> to vector<8x64xf32>
    %271 = arith.mulf %269, %270 : vector<8x64xf32>
    %272 = arith.truncf %271 : vector<8x64xf32> to vector<8x64xbf16>
    %c0_68 = arith.constant 0 : index
    %c0_69 = arith.constant 0 : index
    %273 = vector.load %arg7[%c0_68, %c0_69] : memref<64x32xbf16, #tpu.memory_space<vmem>>, vector<64x32xbf16>
    %cst_70 = arith.constant dense<0.000000e+00> : vector<8x32xf32>
    %274 = tpu.matmul %272, %273, %cst_70 {dimension_numbers = #tpu.dot_dimension_numbers<[1], [0], [0], [1], [0, 0, 1, 1], [], []>} : vector<8x64xbf16>, vector<64x32xbf16>, vector<8x32xf32> -> vector<8x32xf32>
    %275 = arith.addf %274, %246 : vector<8x32xf32>
    %c0_71 = arith.constant 0 : index
    %c0_72 = arith.constant 0 : index
    %276 = vector.load %arg8[%c0_71, %c0_72] : memref<8x128xf32, #tpu.memory_space<vmem>>, vector<1x32xf32>
    %277 = arith.mulf %275, %275 : vector<8x32xf32>
    %cst_73 = arith.constant dense<0.000000e+00> : vector<8xf32>
    %278 = vector.multi_reduction <add>, %277, %cst_73 [1] : vector<8x32xf32> to vector<8xf32>
    %279 = vector.shape_cast %278 : vector<8xf32> to vector<8x1xf32>
    %cst_74 = arith.constant 3.200000e+01 : f32
    %280 = vector.broadcast %cst_74 : f32 to vector<8x1xf32>
    %281 = arith.divf %279, %280 : vector<8x1xf32>
    %cst_75 = arith.constant 9.99999974E-6 : f32
    %282 = vector.broadcast %cst_75 : f32 to vector<8x1xf32>
    %283 = arith.addf %281, %282 : vector<8x1xf32>
    %284 = math.rsqrt %283 : vector<8x1xf32>
    %285 = vector.broadcast %284 : vector<8x1xf32> to vector<8x32xf32>
    %286 = arith.mulf %275, %285 : vector<8x32xf32>
    %287 = vector.broadcast %276 : vector<1x32xf32> to vector<8x32xf32>
    %288 = arith.mulf %286, %287 : vector<8x32xf32>
    %289 = arith.truncf %288 : vector<8x32xf32> to vector<8x32xbf16>
    %c0_76 = arith.constant 0 : index
    %c0_77 = arith.constant 0 : index
    %290 = vector.load %arg9[%c0_76, %c0_77] : memref<32x128xbf16, #tpu.memory_space<vmem>>, vector<32x128xbf16>
    %cst_78 = arith.constant dense<0.000000e+00> : vector<8x128xf32>
    %291 = tpu.matmul %289, %290, %cst_78 {dimension_numbers = #tpu.dot_dimension_numbers<[1], [0], [0], [1], [0, 0, 1, 1], [], []>} : vector<8x32xbf16>, vector<32x128xbf16>, vector<8x128xf32> -> vector<8x128xf32>
    %292 = vector.extract_strided_slice %291 {offsets = [0, 0], sizes = [8, 32], strides = [1, 1]} : vector<8x128xf32> to vector<8x32xf32>
    %293 = vector.extract_strided_slice %291 {offsets = [0, 32], sizes = [8, 16], strides = [1, 1]} : vector<8x128xf32> to vector<8x16xf32>
    %294 = vector.extract_strided_slice %291 {offsets = [0, 48], sizes = [8, 16], strides = [1, 1]} : vector<8x128xf32> to vector<8x16xf32>
    %295 = vector.extract_strided_slice %291 {offsets = [0, 64], sizes = [8, 32], strides = [1, 1]} : vector<8x128xf32> to vector<8x32xf32>
    %296 = vector.extract_strided_slice %291 {offsets = [0, 96], sizes = [8, 16], strides = [1, 1]} : vector<8x128xf32> to vector<8x16xf32>
    %297 = arith.mulf %292, %11 : vector<8x32xf32>
    %298 = arith.mulf %295, %12 : vector<8x32xf32>
    %299 = arith.addf %297, %298 : vector<8x32xf32>
    %300 = arith.mulf %293, %13 : vector<8x16xf32>
    %301 = arith.mulf %296, %14 : vector<8x16xf32>
    %302 = arith.addf %300, %301 : vector<8x16xf32>
    %303 = vector.extract_strided_slice %299 {offsets = [0, 0], sizes = [8, 8], strides = [1, 1]} : vector<8x32xf32> to vector<8x8xf32>
    %304 = arith.truncf %303 : vector<8x8xf32> to vector<8x8xbf16>
    %305 = vector.extract_strided_slice %302 {offsets = [0, 0], sizes = [8, 8], strides = [1, 1]} : vector<8x16xf32> to vector<8x8xf32>
    %306 = arith.truncf %305 : vector<8x8xf32> to vector<8x8xbf16>
    %307 = vector.extract_strided_slice %294 {offsets = [0, 0], sizes = [8, 8], strides = [1, 1]} : vector<8x16xf32> to vector<8x8xf32>
    %308 = arith.truncf %307 : vector<8x8xf32> to vector<8x8xbf16>
    %cst_79 = arith.constant dense<0.000000e+00> : vector<8x8xf32>
    %309 = tpu.matmul %304, %306, %cst_79 {dimension_numbers = #tpu.dot_dimension_numbers<[1], [1], [0], [0], [0, 0, 1, 0], [], []>} : vector<8x8xbf16>, vector<8x8xbf16>, vector<8x8xf32> -> vector<8x8xf32>
    %cst_80 = arith.constant 0.353553385 : f32
    %310 = vector.broadcast %cst_80 : f32 to vector<8x8xf32>
    %311 = arith.mulf %309, %310 : vector<8x8xf32>
    %cst_81 = arith.constant -1.000000e+30 : f32
    %312 = vector.broadcast %cst_81 : f32 to vector<8x8xf32>
    %313 = arith.select %17, %311, %312 : vector<8x8xi1>, vector<8x8xf32>
    %cst_82 = arith.constant dense<0xFF800000> : vector<8xf32>
    %314 = vector.multi_reduction <maximumf>, %313, %cst_82 [1] : vector<8x8xf32> to vector<8xf32>
    %315 = vector.shape_cast %314 : vector<8xf32> to vector<8x1xf32>
    %316 = vector.broadcast %315 : vector<8x1xf32> to vector<8x8xf32>
    %317 = arith.subf %313, %316 : vector<8x8xf32>
    %318 = math.exp %317 : vector<8x8xf32>
    %cst_83 = arith.constant dense<0.000000e+00> : vector<8xf32>
    %319 = vector.multi_reduction <add>, %318, %cst_83 [1] : vector<8x8xf32> to vector<8xf32>
    %320 = vector.shape_cast %319 : vector<8xf32> to vector<8x1xf32>
    %321 = tpu.reciprocal %320 {approx = true} : vector<8x1xf32> -> vector<8x1xf32>
    %322 = vector.broadcast %321 : vector<8x1xf32> to vector<8x8xf32>
    %323 = arith.mulf %318, %322 : vector<8x8xf32>
    %324 = arith.truncf %323 : vector<8x8xf32> to vector<8x8xbf16>
    %cst_84 = arith.constant dense<0.000000e+00> : vector<8x8xf32>
    %325 = tpu.matmul %324, %308, %cst_84 {dimension_numbers = #tpu.dot_dimension_numbers<[1], [0], [0], [1], [0, 0, 1, 1], [], []>} : vector<8x8xbf16>, vector<8x8xbf16>, vector<8x8xf32> -> vector<8x8xf32>
    %326 = vector.extract_strided_slice %299 {offsets = [0, 8], sizes = [8, 8], strides = [1, 1]} : vector<8x32xf32> to vector<8x8xf32>
    %327 = arith.truncf %326 : vector<8x8xf32> to vector<8x8xbf16>
    %328 = vector.extract_strided_slice %302 {offsets = [0, 0], sizes = [8, 8], strides = [1, 1]} : vector<8x16xf32> to vector<8x8xf32>
    %329 = arith.truncf %328 : vector<8x8xf32> to vector<8x8xbf16>
    %330 = vector.extract_strided_slice %294 {offsets = [0, 0], sizes = [8, 8], strides = [1, 1]} : vector<8x16xf32> to vector<8x8xf32>
    %331 = arith.truncf %330 : vector<8x8xf32> to vector<8x8xbf16>
    %cst_85 = arith.constant dense<0.000000e+00> : vector<8x8xf32>
    %332 = tpu.matmul %327, %329, %cst_85 {dimension_numbers = #tpu.dot_dimension_numbers<[1], [1], [0], [0], [0, 0, 1, 0], [], []>} : vector<8x8xbf16>, vector<8x8xbf16>, vector<8x8xf32> -> vector<8x8xf32>
    %cst_86 = arith.constant 0.353553385 : f32
    %333 = vector.broadcast %cst_86 : f32 to vector<8x8xf32>
    %334 = arith.mulf %332, %333 : vector<8x8xf32>
    %cst_87 = arith.constant -1.000000e+30 : f32
    %335 = vector.broadcast %cst_87 : f32 to vector<8x8xf32>
    %336 = arith.select %17, %334, %335 : vector<8x8xi1>, vector<8x8xf32>
    %cst_88 = arith.constant dense<0xFF800000> : vector<8xf32>
    %337 = vector.multi_reduction <maximumf>, %336, %cst_88 [1] : vector<8x8xf32> to vector<8xf32>
    %338 = vector.shape_cast %337 : vector<8xf32> to vector<8x1xf32>
    %339 = vector.broadcast %338 : vector<8x1xf32> to vector<8x8xf32>
    %340 = arith.subf %336, %339 : vector<8x8xf32>
    %341 = math.exp %340 : vector<8x8xf32>
    %cst_89 = arith.constant dense<0.000000e+00> : vector<8xf32>
    %342 = vector.multi_reduction <add>, %341, %cst_89 [1] : vector<8x8xf32> to vector<8xf32>
    %343 = vector.shape_cast %342 : vector<8xf32> to vector<8x1xf32>
    %344 = tpu.reciprocal %343 {approx = true} : vector<8x1xf32> -> vector<8x1xf32>
    %345 = vector.broadcast %344 : vector<8x1xf32> to vector<8x8xf32>
    %346 = arith.mulf %341, %345 : vector<8x8xf32>
    %347 = arith.truncf %346 : vector<8x8xf32> to vector<8x8xbf16>
    %cst_90 = arith.constant dense<0.000000e+00> : vector<8x8xf32>
    %348 = tpu.matmul %347, %331, %cst_90 {dimension_numbers = #tpu.dot_dimension_numbers<[1], [0], [0], [1], [0, 0, 1, 1], [], []>} : vector<8x8xbf16>, vector<8x8xbf16>, vector<8x8xf32> -> vector<8x8xf32>
    %349 = vector.extract_strided_slice %299 {offsets = [0, 16], sizes = [8, 8], strides = [1, 1]} : vector<8x32xf32> to vector<8x8xf32>
    %350 = arith.truncf %349 : vector<8x8xf32> to vector<8x8xbf16>
    %351 = vector.extract_strided_slice %302 {offsets = [0, 8], sizes = [8, 8], strides = [1, 1]} : vector<8x16xf32> to vector<8x8xf32>
    %352 = arith.truncf %351 : vector<8x8xf32> to vector<8x8xbf16>
    %353 = vector.extract_strided_slice %294 {offsets = [0, 8], sizes = [8, 8], strides = [1, 1]} : vector<8x16xf32> to vector<8x8xf32>
    %354 = arith.truncf %353 : vector<8x8xf32> to vector<8x8xbf16>
    %cst_91 = arith.constant dense<0.000000e+00> : vector<8x8xf32>
    %355 = tpu.matmul %350, %352, %cst_91 {dimension_numbers = #tpu.dot_dimension_numbers<[1], [1], [0], [0], [0, 0, 1, 0], [], []>} : vector<8x8xbf16>, vector<8x8xbf16>, vector<8x8xf32> -> vector<8x8xf32>
    %cst_92 = arith.constant 0.353553385 : f32
    %356 = vector.broadcast %cst_92 : f32 to vector<8x8xf32>
    %357 = arith.mulf %355, %356 : vector<8x8xf32>
    %cst_93 = arith.constant -1.000000e+30 : f32
    %358 = vector.broadcast %cst_93 : f32 to vector<8x8xf32>
    %359 = arith.select %17, %357, %358 : vector<8x8xi1>, vector<8x8xf32>
    %cst_94 = arith.constant dense<0xFF800000> : vector<8xf32>
    %360 = vector.multi_reduction <maximumf>, %359, %cst_94 [1] : vector<8x8xf32> to vector<8xf32>
    %361 = vector.shape_cast %360 : vector<8xf32> to vector<8x1xf32>
    %362 = vector.broadcast %361 : vector<8x1xf32> to vector<8x8xf32>
    %363 = arith.subf %359, %362 : vector<8x8xf32>
    %364 = math.exp %363 : vector<8x8xf32>
    %cst_95 = arith.constant dense<0.000000e+00> : vector<8xf32>
    %365 = vector.multi_reduction <add>, %364, %cst_95 [1] : vector<8x8xf32> to vector<8xf32>
    %366 = vector.shape_cast %365 : vector<8xf32> to vector<8x1xf32>
    %367 = tpu.reciprocal %366 {approx = true} : vector<8x1xf32> -> vector<8x1xf32>
    %368 = vector.broadcast %367 : vector<8x1xf32> to vector<8x8xf32>
    %369 = arith.mulf %364, %368 : vector<8x8xf32>
    %370 = arith.truncf %369 : vector<8x8xf32> to vector<8x8xbf16>
    %cst_96 = arith.constant dense<0.000000e+00> : vector<8x8xf32>
    %371 = tpu.matmul %370, %354, %cst_96 {dimension_numbers = #tpu.dot_dimension_numbers<[1], [0], [0], [1], [0, 0, 1, 1], [], []>} : vector<8x8xbf16>, vector<8x8xbf16>, vector<8x8xf32> -> vector<8x8xf32>
    %372 = vector.extract_strided_slice %299 {offsets = [0, 24], sizes = [8, 8], strides = [1, 1]} : vector<8x32xf32> to vector<8x8xf32>
    %373 = arith.truncf %372 : vector<8x8xf32> to vector<8x8xbf16>
    %374 = vector.extract_strided_slice %302 {offsets = [0, 8], sizes = [8, 8], strides = [1, 1]} : vector<8x16xf32> to vector<8x8xf32>
    %375 = arith.truncf %374 : vector<8x8xf32> to vector<8x8xbf16>
    %376 = vector.extract_strided_slice %294 {offsets = [0, 8], sizes = [8, 8], strides = [1, 1]} : vector<8x16xf32> to vector<8x8xf32>
    %377 = arith.truncf %376 : vector<8x8xf32> to vector<8x8xbf16>
    %cst_97 = arith.constant dense<0.000000e+00> : vector<8x8xf32>
    %378 = tpu.matmul %373, %375, %cst_97 {dimension_numbers = #tpu.dot_dimension_numbers<[1], [1], [0], [0], [0, 0, 1, 0], [], []>} : vector<8x8xbf16>, vector<8x8xbf16>, vector<8x8xf32> -> vector<8x8xf32>
    %cst_98 = arith.constant 0.353553385 : f32
    %379 = vector.broadcast %cst_98 : f32 to vector<8x8xf32>
    %380 = arith.mulf %378, %379 : vector<8x8xf32>
    %cst_99 = arith.constant -1.000000e+30 : f32
    %381 = vector.broadcast %cst_99 : f32 to vector<8x8xf32>
    %382 = arith.select %17, %380, %381 : vector<8x8xi1>, vector<8x8xf32>
    %cst_100 = arith.constant dense<0xFF800000> : vector<8xf32>
    %383 = vector.multi_reduction <maximumf>, %382, %cst_100 [1] : vector<8x8xf32> to vector<8xf32>
    %384 = vector.shape_cast %383 : vector<8xf32> to vector<8x1xf32>
    %385 = vector.broadcast %384 : vector<8x1xf32> to vector<8x8xf32>
    %386 = arith.subf %382, %385 : vector<8x8xf32>
    %387 = math.exp %386 : vector<8x8xf32>
    %cst_101 = arith.constant dense<0.000000e+00> : vector<8xf32>
    %388 = vector.multi_reduction <add>, %387, %cst_101 [1] : vector<8x8xf32> to vector<8xf32>
    %389 = vector.shape_cast %388 : vector<8xf32> to vector<8x1xf32>
    %390 = tpu.reciprocal %389 {approx = true} : vector<8x1xf32> -> vector<8x1xf32>
    %391 = vector.broadcast %390 : vector<8x1xf32> to vector<8x8xf32>
    %392 = arith.mulf %387, %391 : vector<8x8xf32>
    %393 = arith.truncf %392 : vector<8x8xf32> to vector<8x8xbf16>
    %cst_102 = arith.constant dense<0.000000e+00> : vector<8x8xf32>
    %394 = tpu.matmul %393, %377, %cst_102 {dimension_numbers = #tpu.dot_dimension_numbers<[1], [0], [0], [1], [0, 0, 1, 1], [], []>} : vector<8x8xbf16>, vector<8x8xbf16>, vector<8x8xf32> -> vector<8x8xf32>
    %395 = tpu.concatenate %325, %348, %371, %394 in 1 : vector<8x8xf32>, vector<8x8xf32>, vector<8x8xf32>, vector<8x8xf32> -> vector<8x32xf32>
    %396 = arith.truncf %395 : vector<8x32xf32> to vector<8x32xbf16>
    %c0_103 = arith.constant 0 : index
    %c0_104 = arith.constant 0 : index
    %397 = vector.load %arg10[%c0_103, %c0_104] : memref<32x32xbf16, #tpu.memory_space<vmem>>, vector<32x32xbf16>
    %cst_105 = arith.constant dense<0.000000e+00> : vector<8x32xf32>
    %398 = tpu.matmul %396, %397, %cst_105 {dimension_numbers = #tpu.dot_dimension_numbers<[1], [0], [0], [1], [0, 0, 1, 1], [], []>} : vector<8x32xbf16>, vector<32x32xbf16>, vector<8x32xf32> -> vector<8x32xf32>
    %399 = arith.addf %398, %275 : vector<8x32xf32>
    %c1_106 = arith.constant 1 : index
    %c0_107 = arith.constant 0 : index
    %400 = vector.load %arg8[%c1_106, %c0_107] : memref<8x128xf32, #tpu.memory_space<vmem>>, vector<1x32xf32>
    %401 = arith.mulf %399, %399 : vector<8x32xf32>
    %cst_108 = arith.constant dense<0.000000e+00> : vector<8xf32>
    %402 = vector.multi_reduction <add>, %401, %cst_108 [1] : vector<8x32xf32> to vector<8xf32>
    %403 = vector.shape_cast %402 : vector<8xf32> to vector<8x1xf32>
    %cst_109 = arith.constant 3.200000e+01 : f32
    %404 = vector.broadcast %cst_109 : f32 to vector<8x1xf32>
    %405 = arith.divf %403, %404 : vector<8x1xf32>
    %cst_110 = arith.constant 9.99999974E-6 : f32
    %406 = vector.broadcast %cst_110 : f32 to vector<8x1xf32>
    %407 = arith.addf %405, %406 : vector<8x1xf32>
    %408 = math.rsqrt %407 : vector<8x1xf32>
    %409 = vector.broadcast %408 : vector<8x1xf32> to vector<8x32xf32>
    %410 = arith.mulf %399, %409 : vector<8x32xf32>
    %411 = vector.broadcast %400 : vector<1x32xf32> to vector<8x32xf32>
    %412 = arith.mulf %410, %411 : vector<8x32xf32>
    %413 = arith.truncf %412 : vector<8x32xf32> to vector<8x32xbf16>
    %c0_111 = arith.constant 0 : index
    %c0_112 = arith.constant 0 : index
    %414 = vector.load %arg11[%c0_111, %c0_112] : memref<32x128xbf16, #tpu.memory_space<vmem>>, vector<32x128xbf16>
    %cst_113 = arith.constant dense<0.000000e+00> : vector<8x128xf32>
    %415 = tpu.matmul %413, %414, %cst_113 {dimension_numbers = #tpu.dot_dimension_numbers<[1], [0], [0], [1], [0, 0, 1, 1], [], []>} : vector<8x32xbf16>, vector<32x128xbf16>, vector<8x128xf32> -> vector<8x128xf32>
    %416 = vector.extract_strided_slice %415 {offsets = [0, 0], sizes = [8, 64], strides = [1, 1]} : vector<8x128xf32> to vector<8x64xf32>
    %417 = arith.negf %416 : vector<8x64xf32>
    %418 = math.exp %417 : vector<8x64xf32>
    %cst_114 = arith.constant 1.000000e+00 : f32
    %419 = vector.broadcast %cst_114 : f32 to vector<8x64xf32>
    %420 = arith.addf %419, %418 : vector<8x64xf32>
    %421 = arith.divf %419, %420 : vector<8x64xf32>
    %422 = arith.mulf %416, %421 : vector<8x64xf32>
    %423 = vector.extract_strided_slice %415 {offsets = [0, 64], sizes = [8, 64], strides = [1, 1]} : vector<8x128xf32> to vector<8x64xf32>
    %424 = arith.mulf %422, %423 : vector<8x64xf32>
    %425 = arith.truncf %424 : vector<8x64xf32> to vector<8x64xbf16>
    %c0_115 = arith.constant 0 : index
    %c0_116 = arith.constant 0 : index
    %426 = vector.load %arg12[%c0_115, %c0_116] : memref<64x32xbf16, #tpu.memory_space<vmem>>, vector<64x32xbf16>
    %cst_117 = arith.constant dense<0.000000e+00> : vector<8x32xf32>
    %427 = tpu.matmul %425, %426, %cst_117 {dimension_numbers = #tpu.dot_dimension_numbers<[1], [0], [0], [1], [0, 0, 1, 1], [], []>} : vector<8x64xbf16>, vector<64x32xbf16>, vector<8x32xf32> -> vector<8x32xf32>
    %428 = arith.addf %427, %399 : vector<8x32xf32>
    %c0_118 = arith.constant 0 : index
    %c0_119 = arith.constant 0 : index
    %429 = vector.load %arg13[%c0_118, %c0_119] : memref<1x32xf32, #tpu.memory_space<vmem>>, vector<1x32xf32>
    %430 = arith.mulf %428, %428 : vector<8x32xf32>
    %cst_120 = arith.constant dense<0.000000e+00> : vector<8xf32>
    %431 = vector.multi_reduction <add>, %430, %cst_120 [1] : vector<8x32xf32> to vector<8xf32>
    %432 = vector.shape_cast %431 : vector<8xf32> to vector<8x1xf32>
    %cst_121 = arith.constant 3.200000e+01 : f32
    %433 = vector.broadcast %cst_121 : f32 to vector<8x1xf32>
    %434 = arith.divf %432, %433 : vector<8x1xf32>
    %cst_122 = arith.constant 9.99999974E-6 : f32
    %435 = vector.broadcast %cst_122 : f32 to vector<8x1xf32>
    %436 = arith.addf %434, %435 : vector<8x1xf32>
    %437 = math.rsqrt %436 : vector<8x1xf32>
    %438 = vector.broadcast %437 : vector<8x1xf32> to vector<8x32xf32>
    %439 = arith.mulf %428, %438 : vector<8x32xf32>
    %440 = vector.broadcast %429 : vector<1x32xf32> to vector<8x32xf32>
    %441 = arith.mulf %439, %440 : vector<8x32xf32>
    %c0_123 = arith.constant 0 : index
    %c0_124 = arith.constant 0 : index
    %442 = vector.load %arg14[%c0_123, %c0_124] : memref<8x32xf32, #tpu.memory_space<vmem>>, vector<8x32xf32>
    tpu.vector_store %arg14[%c0_123, %c0_124], %441 {strides = array<i32>} : memref<8x32xf32, #tpu.memory_space<vmem>>, vector<8x32xf32>,
    return
  }
}

</mosaic_0001>

<bundles_post_ra>
// kernel: _lambda_.1
= control target key start
LH: loop header
LB: loop body
LE: loop exit
PB: predicated region body
PF: predicated region fallthrough
CT: control target
= control target key end

     0   :  { %v2454_v3 = vmov 0   ;;  %v2455_v4 = vmov 0.0|0.0   ;;  %vm2456_vm0 = vmmov 0   ;;  %v2457_v8 = vmov 0.0   ;;  %s3023_s0 = inlined_call_operand.vmem [shape: s32[8,1], index: 0, kind: input, shape index: {}]   ;;  %s3024_s1 = inlined_call_operand.vmem [shape: f32[8,16], index: 1, kind: input, shape index: {}]   ;;  %s3025_s2 = inlined_call_operand.vmem [shape: f32[128,32], index: 2, kind: input, shape index: {}]   ;;  %s3026_s3 = inlined_call_operand.vmem [shape: f32[16,128], index: 3, kind: input, shape index: {}]   ;;  %s3027_s4 = inlined_call_operand.vmem [shape: bf16[32,164], index: 4, kind: input, shape index: {}]   ;;  %s3028_s5 = inlined_call_operand.vmem [shape: bf16[64,32], index: 5, kind: input, shape index: {}]   ;;  %s3029_s6 = inlined_call_operand.vmem [shape: bf16[32,128], index: 6, kind: input, shape index: {}]   ;;  %s3030_s7 = inlined_call_operand.vmem [shape: bf16[64,32], index: 7, kind: input, shape index: {}]   ;;  %s3031_s8 = inlined_call_operand.vmem [shape: f32[8,128], index: 8, kind: input, shape index: {}]   ;;  %s3032_s9 = inlined_call_operand.vmem [shape: bf16[32,128], index: 9, kind: input, shape index: {}]   ;;  %s3033_s10 = inlined_call_operand.vmem [shape: bf16[32,32], index: 10, kind: input, shape index: {}]   ;;  %s3034_s11 = inlined_call_operand.vmem [shape: bf16[32,128], index: 11, kind: input, shape index: {}]   ;;  %s3035_s12 = inlined_call_operand.vmem [shape: bf16[64,32], index: 12, kind: input, shape index: {}]   ;;  %s3036_s13 = inlined_call_operand.vmem [shape: f32[1,32], index: 13, kind: input, shape index: {}]   ;;  %s3037_s14 = inlined_call_operand.hbm [shape: f32[8,32], index: 14, kind: output, shape index: {}]  }
   0x1   :  { %v49_v0 = vld [vmem:[%s3023_s0] sm:$0xff]  ;;  %v59_v2 = vld [vmem:[%s3025_s2 + $0x8] sm:$0xff]  ;;  %2334 = vset.pattern.permute.xlu0 %v2454_v3  ;;  %2265 = vmatprep.subr.bf16.mxu0 %v2455_v4  ;;  %v60_v6 = vld [vmem:[%s3025_s2 + $0x10] sm:$0xff] }
   0x2   :  { %v58_v1 = vld [vmem:[%s3025_s2] sm:$0xff]  ;;  %v61_v7 = vld [vmem:[%s3025_s2 + $0x18] sm:$0xff]  ;;  %53 = vperm.xlu0 %2334, %v49_v0   ;;  %2111 = vmatprep.mubr.msk.f32.mxu0 %vm2456_vm0, %v2457_v8  ;;  %v63_v11 = vld [vmem:[%s3025_s2 + $0x28] sm:$0xff] }
   0x3   :  { %v2266_v5 = vpack.c.bf16 %v59_v2, %v58_v1  ;;  %v2269_v9 = vpack.c.bf16 %v61_v7, %v60_v6  ;;  %251 = vmatprep.mubr.bf16.mxu1 %v2454_v3  ;;  %v62_v10 = vld [vmem:[%s3025_s2 + $0x20] sm:$0xff]  ;;  %v64_v12 = vld [vmem:[%s3025_s2 + $0x30] sm:$0xff]  ;;  %v65_v13 = vld [vmem:[%s3025_s2 + $0x38] sm:$0xff] }
   0x4   :  { %v2272_v14 = vpack.c.bf16 %v63_v11, %v62_v10  ;;  %v66_v15 = vld [vmem:[%s3025_s2 + $0x40] sm:$0xff]  ;;  %v67_v16 = vld [vmem:[%s3025_s2 + $0x48] sm:$0xff]  ;;  %v2275_v17 = vpack.c.bf16 %v65_v13, %v64_v12  ;;  %v68_v18 = vld [vmem:[%s3025_s2 + $0x50] sm:$0xff] }
   0x5   :  { %2267 = vmatpush3.bf16.msra.mxu0 %v2266_v5  ;;  %v69_v19 = vld [vmem:[%s3025_s2 + $0x58] sm:$0xff]  ;;  %v2278_v20 = vpack.c.bf16 %v67_v16, %v66_v15  ;;  %v70_v21 = vld [vmem:[%s3025_s2 + $0x60] sm:$0xff]  ;;  %v71_v23 = vld [vmem:[%s3025_s2 + $0x68] sm:$0xff] }
   0x6   :  { %2268 = vmatprep.subr.bf16.mxu0 %v2455_v4  ;;  %v2281_v22 = vpack.c.bf16 %v69_v19, %v68_v18 }
   0x9   :  { %2270 = vmatpush3.bf16.msra.mxu0 %v2269_v9 }
   0xa   :  { %2271 = vmatprep.subr.bf16.mxu0 %v2455_v4 }
   0xd   :  { %2273 = vmatpush3.bf16.msra.mxu0 %v2272_v14 }
   0xe   :  { %2274 = vmatprep.subr.bf16.mxu0 %v2455_v4 }
  0x11   :  { %2276 = vmatpush3.bf16.msra.mxu0 %v2275_v17 }
  0x12   :  { %2277 = vmatprep.subr.bf16.mxu0 %v2455_v4 }
  0x15   :  { %2279 = vmatpush3.bf16.msra.mxu0 %v2278_v20 }
  0x16   :  { %2280 = vmatprep.subr.bf16.mxu0 %v2455_v4 }
  0x17   :  { %19 = vsyncpa [#allocation3], 0  ;;  %v2284_v24 = vpack.c.bf16 %v71_v23, %v70_v21  ;;  %v72_v25 = vld [vmem:[%s3025_s2 + $0x70] sm:$0xff]  ;;  %v73_v26 = vld [vmem:[%s3025_s2 + $0x78] sm:$0xff]  ;;  %v50_v28 = vlaneseq  ;;  %v2458_v31 = vmov 1.0   ;;  %vm177_vm2 = vcmask 261120  }
  0x18   :  { %v2287_v27 = vpack.c.bf16 %v73_v26, %v72_v25  ;;  %v2344_v36 = vld [vmem:[%s3027_s4 + $0x4] ss:$8 sps:$4 sm:$0xff]   ;;  %v2346_v37 = vld [vmem:[%s3027_s4] ss:$8 sps:$4 sm:$0xff]   ;;  %v2347_v38 = vld [vmem:[%s3027_s4 + $0x14] ss:$8 sps:$4 sm:$0xff]  }
  0x19   :  { %2282 = vmatpush3.bf16.msra.mxu0 %v2281_v22  ;;  %v2615_v29 = vand.u32 127, %v50_v28  ;;  %219 = vmatprep.subr.bf16.mxu1 %v2344_v36  ;;  %v2349_v39 = vld [vmem:[%s3027_s4 + $0x10] ss:$8 sps:$4 sm:$0xff]   ;;  %v1957_v40 = vld [vmem:[%s3026_s3 + $0x5] ss:$0 sm:$0xff]  ;;  %s2459_s0 = smov 32  }
  0x1a   :  { %2283 = vmatprep.subr.bf16.mxu0 %v2455_v4  ;;  %220 = vmatpush1.bf16.msra.mxu1 %v2346_v37  ;;  %v1944_v45 = vld [vmem:[%s3026_s3] ss:$0 sm:$0xff]  ;;  %s2460_s4 = smov 64   ;;  %v1950_v57 = vld [vmem:[%s3026_s3 + $0xb] ss:$0 sm:$0xff]  ;;  %v2461_v58 = vmov 32  }
  0x1b   :  { %221 = vmatprep.subr.bf16.mxu1 %v2347_v38  ;;  %362 = vrot.lane.b32.xlu1 %v1957_v40, %s2459_s0  ;;  %v2661_v61 = vld [vmem:[%s3026_s3 + $0x3] sm:$0x1]  ;;  %v2667_v0 = vld [vmem:[%s3026_s3 + $0x4] sm:$0x1]  ;;  %s2462_s29 = smov 96   ;;  %vm277_vm4 = vcmask 523264  }
  0x1c   :  { %2335 = vset.pattern.permute.xlu1 %v2461_v58  ;;  %2289 = vpush %v2661_v61  ;;  %v1951_v10 = vld [vmem:[%s3026_s3 + $0x8] ss:$0 sm:$0xff]  ;;  %v1952_v18 = vld [vmem:[%s3026_s3 + $0x9] ss:$0 sm:$0xff]  ;;  %v1953_v21 = vld [vmem:[%s3026_s3 + $0xa] ss:$0 sm:$0xff] }
  0x1d   :  { %2285 = vmatpush3.bf16.msra.mxu0 %v2284_v24  ;;  %2291 = vpush %v2667_v0  ;;  %v1954_v23 = vld [vmem:[%s3026_s3 + $0x2] ss:$0 sm:$0xff]  ;;  %v2463_v25 = vmov 33   ;;  %vm85_vm9 = vcmask 64512   ;;  %s2464_s22 = smov 127   ;;  %s2467_s23 = smov 126  }
  0x1e   :  { %2286 = vmatprep.subr.bf16.mxu0 %v2455_v4  ;;  %222 = vmatpush1.bf16.msra.mxu1 %v2349_v39  ;;  %v2672_v4 = vshrl.u32 %v50_v28, 7  ;;  %v2465_v28 = vmov 34   ;;  %vm87_vm10 = vcmask 130048   ;;  %s2469_s24 = smov 112   ;;  %s2470_s25 = smov 125   ;;  %vm549_vm12 = vcmask 1043456  }
  0x1f   :  { %2119 = vmatprep.subr.bf16.mxu1 %v2457_v8  ;;  %s2473_s30 = smov 48   ;;  %s2474_s15 = smov 16   ;;  %vm877_vm13 = vcmask 392192   ;;  %vm89_vm14 = vcmask 195584  }
  0x20   :  { %vm281_vm5 = vcmp.ge.s32.totalorder %v2672_v4, 3  ;;  %vm298_vm6 = vcmp.ge.s32.totalorder %v2672_v4, 2  ;;  %vm315_vm7 = vcmp.ge.s32.totalorder %v2672_v4, 1  ;;  %vm2697_vm8 = vcmp.le.s32.totalorder %v2615_v29, %v2672_v4  ;;  %s2479_s20 = smov 104  }
  0x21   :  { %2288 = vmatpush3.bf16.msra.mxu0 %v2287_v27  ;;  %v1941_v26 = vsel %vm2697_vm8, 1.0, %v2457_v8  ;;  %vm102_vm11 = vcmp.eq.s32.totalorder %v2672_v4, %v2615_v29 }
  0x22   :  { %2114 = vmatprep.subr.mxu0 %v2457_v8 }
  0x4d   :  { %s2729_s26 = spop %2289 }
  0x4e   :  { %s2292_s27 = spop %2291 }
  0x81   :  { %v54_v30 = vpop.permute.xlu0 %53 }
  0x82   :  { %vm55_vm1 = vcmp.eq.s32.totalorder %v54_v30, %v2615_v29  ;;  %v2466_v30 = vmov 35  }
  0x83   :  { %2112 = vmatmul.mubr.msk.f32.vlgmr.msra.gmra.mrb[0].mxu0 %vm55_vm1, %v2458_v31  ;;  %v2468_v31 = vmov 1  }
  0x84   :  { %2116 = vmatprep.mubr.msk.f32.mxu0 %vm2456_vm0, %v2457_v8  ;;  %2340 = vset.pattern.permute.xlu0 %v2468_v31 }
  0x8d   :  { %v363_v49 = vpop.permute.xlu1 %362 }
 0x156   :  { %v2620_v32 = vpop.f32.mrb[0].mxu0 }
 0x157   :  { %v2113_v33 = vpop.f32.mrb[1].mxu0  ;;  %v176_v34 = vmul.f32 %v2620_v32, %v2620_v32 }
 0x159   :  { %v178_v35 = vsel %vm177_vm2, %v176_v34, 0.0 }
 0x15a   :  { %179 = vadd.xlane.f32.xlu0 %v178_v35 }
 0x1e7   :  { %v180_v41 = vpop.xlane.xlu0 %179 }
 0x1e8   :  { %v182_v42 = vmul.f32 0.03125, %v180_v41 }
 0x1ea   :  { %v183_v43 = vadd.f32 1e-05, %v182_v42 }
 0x1ec   :  { %2370 = vrsqrt.f32 %v183_v43 }
 0x1f6   :  { %v2371_v44 = vpop.eup %2370 }
 0x1f7   :  { %v185_v46 = vmul.f32 %v2371_v44, %v2620_v32 }
 0x1f9   :  { %v190_v47 = vmul.f32 %v1944_v45, %v185_v46 }
 0x1fb   :  { %v191_v48 = vpack.c.bf16 %v190_v47, %v190_v47 }
 0x1fd   :  { %1949 = vmatmul.mubr.msk.bf16.vlgmr.msra.gmra.mrb[0].mxu1 %vm177_vm2, %v191_v48 }
 0x1fe   :  { %2121 = vmatprep.mubr.msk.bf16.mxu1 %vm2456_vm0, %v2457_v8 }
 0x2d0   :  { %v2649_v50 = vpop.f32.mrb[0].mxu1 }
 0x2d1   :  { %273 = vrot.lane.b32.xlu1 %v2649_v50, %s2460_s4  ;;  %v255_v51 = vpop.f32.mrb[1].mxu1 }
 0x2d2   :  { %v365_v52 = vadd.f32 %v363_v49, %v255_v51  ;;  %v257_v53 = vpop.f32.mrb[2].mxu1 }
 0x2d3   :  { %v258_v54 = vpop.f32.mrb[3].mxu1 }
 0x2d4   :  { %v366_v55 = vmin.f32 %v365_v52, 20.0  ;;  %vm367_vm3 = vcmp.gt.f32.partialorder %v365_v52, 20.0 }
 0x2d5   :  { %275 = vrot.lane.b32.xlu1 %v255_v51, %s2460_s4 }
 0x2d6   :  { %v368_v56 = vmul.f32 1.442695, %v366_v55 }
 0x2d8   :  { %2372 = vpow2.f32 %v368_v56 }
 0x2d9   :  { %266 = vrot.lane.b32.xlu1 %v1950_v57, %s2460_s4 }
 0x2e2   :  { %v2373_v59 = vpop.eup %2372 }
 0x2e3   :  { %v370_v60 = vadd.f32 1.0, %v2373_v59 }
 0x2e5   :  { %2374 = vlog2.f32 %v370_v60 }
 0x2ef   :  { %v2375_v62 = vpop.eup %2374 }
 0x2f0   :  { %v372_v63 = vmul.f32 0.6931472, %v2375_v62 }
 0x2f2   :  { %v373_v1 = vsel %vm367_vm3, %v365_v52, %v372_v63 }
 0x2f3   :  { %375 = vrot.lane.b32.xlu1 %v373_v1, %s2462_s29 }
 0x343   :  { %v274_v2 = vpop.permute.xlu1 %273 }
 0x347   :  { %v276_v5 = vpop.permute.xlu1 %275 }
 0x348   :  { %v278_v6 = vsel %vm277_vm4, %v274_v2, %v276_v5 }
 0x349   :  { %v280_v7 = vrot.slane %v278_v6, 5  ;;  %v297_v9 = vrot.slane %v278_v6, 6  ;;  %v314_v16 = vrot.slane %v278_v6, 7 }
 0x34b   :  { %v267_v11 = vpop.permute.xlu1 %266  ;;  %v284_v12 = vsel %vm281_vm5, %v280_v7, 0.0  ;;  %v301_v17 = vsel %vm298_vm6, %v297_v9, 0.0  ;;  %v318_v20 = vsel %vm315_vm7, %v314_v16, 0.0 }
 0x34c   :  { %v269_v13 = vmul.f32 %v267_v11, %v2649_v50  ;;  %v270_v14 = vmul.f32 %v267_v11, %v255_v51  ;;  %v290_v15 = vmul.f32 %v1951_v10, %v284_v12  ;;  %v307_v19 = vmul.f32 %v1952_v18, %v301_v17 }
 0x34d   :  { %v324_v22 = vmul.f32 %v1953_v21, %v318_v20  ;;  %v2472_v11 = vmov 3  }
 0x34e   :  { %292 = vrot.lane.b32.xlu1 %v290_v15, %s2460_s4 }
 0x352   :  { %309 = vrot.lane.b32.xlu1 %v307_v19, %s2460_s4 }
 0x356   :  { %326 = vrot.lane.b32.xlu1 %v324_v22, %s2460_s4  ;;  %v536_v22 = vstv %s2292_s27 }
 0x35a   :  { %337 = vrot.lane.b32.xlu1 %v1954_v23, %s2460_s4 }
 0x35e   :  { %529 = vperm.xlu1 %2335, %v373_v1  }
 0x362   :  { %2336 = vset.pattern.permute.xlu1 %v2463_v25  ;;  %v1942_v25 = vsel %vm102_vm11, 1.0, %v2457_v8 }
 0x363   :  { %619 = vperm.xlu1 %2336, %v373_v1  }
 0x365   :  { %v376_v27 = vpop.permute.xlu1 %375 }
 0x366   :  { %2115 = vmatpush3.msra.mxu0 %v376_v27 }
 0x367   :  { %607 = vrot.lane.b32.xlu1 %v2661_v61, %s2464_s22  ;;  %2117 = vmatmul.mubr.msk.f32.vlgmr.msra.gmra.mrb[2].mxu0 %vm85_vm9, %v1941_v26 }
 0x368   :  { %2337 = vset.pattern.permute.xlu1 %v2465_v28  ;;  %2131 = vmatprep.subr.bf16.mxu0 %v2457_v8 }
 0x369   :  { %2133 = vmatprep.mubr.msk.bf16.mxu0 %vm2456_vm0, %v2457_v8 }
 0x36b   :  { %709 = vperm.xlu1 %2337, %v373_v1  }
 0x36f   :  { %2338 = vset.pattern.permute.xlu1 %v2466_v30 }
 0x370   :  { %799 = vperm.xlu1 %2338, %v373_v1  }
 0x374   :  { %624 = vrot.lane.b32.xlu1 %v2667_v0, %s2464_s22 }
 0x375   :  { %2339 = vset.pattern.permute.xlu1 %v2454_v3 }
 0x378   :  { %714 = vrot.lane.b32.xlu1 %v2667_v0, %s2467_s23 }
 0x3c0   :  { %v293_v33 = vpop.permute.xlu1 %292 }
 0x3c1   :  { %v295_v34 = vadd.f32 %v293_v33, %v269_v13  ;;  %v296_v37 = vadd.f32 %v293_v33, %v270_v14 }
 0x3c4   :  { %v310_v35 = vpop.permute.xlu1 %309 }
 0x3c5   :  { %v312_v36 = vadd.f32 %v310_v35, %v295_v34  ;;  %v313_v39 = vadd.f32 %v310_v35, %v296_v37 }
 0x3c8   :  { %v327_v38 = vpop.permute.xlu1 %326 }
 0x3c9   :  { %v329_v40 = vadd.f32 %v327_v38, %v312_v36  ;;  %v330_v41 = vadd.f32 %v327_v38, %v313_v39 }
 0x3cc   :  { %v338_v42 = vpop.permute.xlu1 %337 }
 0x3cd   :  { %v340_v43 = vadd.f32 %v338_v42, %v329_v40  ;;  %v341_v44 = vadd.f32 %v338_v42, %v330_v41 }
 0x3cf   :  { %v1956_v45 = vmul.f32 -1.442695, %v341_v44  ;;  %v1955_v58 = vmul.f32 -1.442695, %v340_v43 }
 0x3d1   :  { %2376 = vpow2.f32 %v1956_v45 }
 0x3db   :  { %v2377_v3 = vpop.eup %2376 }
 0x3dc   :  { %v349_v46 = vadd.f32 1.0, %v2377_v3 }
 0x3dd   :  { %v530_v47 = vpop.permute.xlu1 %529 }
 0x3de   :  { %2378 = vrcp.f32 %v349_v46 }
 0x3df   :  { %2380 = vpow2.f32 %v1955_v58 }
 0x3e2   :  { %v620_v48 = vpop.permute.xlu1 %619 }
 0x3e6   :  { %v608_v49 = vpop.permute.xlu1 %607 }
 0x3e7   :  { %2293 = vpush %v608_v49 }
 0x3e8   :  { %v2379_v51 = vpop.eup %2378 }
 0x3e9   :  { %v355_v52 = vmul.f32 %v2379_v51, %v341_v44  ;;  %v2381_v59 = vpop.eup %2380 }
 0x3ea   :  { %v710_v53 = vpop.permute.xlu1 %709  ;;  %v348_v60 = vadd.f32 1.0, %v2381_v59 }
 0x3eb   :  { %v451_v54 = vpack.c.bf16 %v355_v52, %v355_v52 }
 0x3ec   :  { %2382 = vrcp.f32 %v348_v60  ;;  %v520_v60 = vstv %s2729_s26 }
 0x3ed   :  { %453 = vrot.lane.b32.xlu0 %v451_v54, %s2469_s24  ;;  %v459_v55 = vsel %vm87_vm10, %v451_v54, 0 }
 0x3ee   :  { %2120 = vmatpush3.bf16.xpose.msra.mxu1 %v459_v55 }
 0x3ef   :  { %v800_v56 = vpop.permute.xlu1 %799  ;;  %2125 = vmatprep.subr.bf16.mxu1 %v2457_v8 }
 0x3f1   :  { %697 = vrot.lane.b32.xlu0 %v2661_v61, %s2467_s23 }
 0x3f3   :  { %v625_v57 = vpop.permute.xlu1 %624 }
 0x3f4   :  { %2295 = vpush %v625_v57 }
 0x3f5   :  { %787 = vrot.lane.b32.xlu0 %v2661_v61, %s2470_s25  ;;  %v2471_v61 = vmov 2  }
 0x3f6   :  { %v2383_v62 = vpop.eup %2382 }
 0x3f7   :  { %v2721_v63 = vmul.f32 %v2383_v62, %v340_v43 }
 0x3f9   :  { %v532_v1 = vmul.f32 %v530_v47, %v2721_v63  ;;  %v712_v7 = vmul.f32 %v710_v53, %v2721_v63  ;;  %v622_v10 = vmul.f32 %v620_v48, %v2721_v63  ;;  %v802_v13 = vmul.f32 %v800_v56, %v2721_v63 }
 0x3fa   :  { %v538_v23 = vmul.f32 %v536_v22, %v2721_v63 }
 0x3fb   :  { %v533_v6 = vpack.c.bf16 %v532_v1, %v532_v1  ;;  %v713_v9 = vpack.c.bf16 %v712_v7, %v712_v7  ;;  %v623_v12 = vpack.c.bf16 %v622_v10, %v622_v10  ;;  %v803_v14 = vpack.c.bf16 %v802_v13, %v802_v13 }
 0x418   :  { %s2732_s28 = spop %2293 }
 0x419   :  { %v610_v62 = vstv %s2732_s28 }
 0x425   :  { %s2296_s2 = spop %2295 }
 0x426   :  { %v627_v15 = vstv %s2296_s2  ;;  %s2475_s2 = smov 8  }
 0x427   :  { %v629_v16 = vmul.f32 %v627_v15, %v2721_v63 }
 0x43a   :  { %v447_v2 = vpop.f32.mrb[2].mxu0 }
 0x43b   :  { %594 = vperm.xlu0 %2340, %v447_v2   ;;  %505 = vperm.xlu1 %2339, %v447_v2   ;;  %v2118_v5 = vpop.f32.mrb[3].mxu0 }
 0x43f   :  { %540 = vrot.lane.b32.xlu0 %v533_v6, %s2460_s4  ;;  %2341 = vset.pattern.permute.xlu1 %v2471_v61 }
 0x440   :  { %684 = vperm.xlu1 %2341, %v447_v2   ;;  %2343 = vset.pattern.permute.xlu0 %v2466_v30 }
 0x443   :  { %721 = vrot.lane.b32.xlu0 %v713_v9, %s2459_s0 }
 0x444   :  { %2342 = vset.pattern.permute.xlu1 %v2472_v11 }
 0x445   :  { %774 = vperm.xlu1 %2342, %v447_v2  }
 0x447   :  { %804 = vrot.lane.b32.xlu0 %v2667_v0, %s2470_s25  ;;  %v715_v0 = vpop.permute.xlu1 %714 }
 0x449   :  { %631 = vrot.lane.b32.xlu1 %v623_v12, %s2473_s30 }
 0x44d   :  { %811 = vrot.lane.b32.xlu1 %v803_v14, %s2474_s15 }
 0x451   :  { %634 = vrot.lane.b32.xlu1 %v629_v16, %s2473_s30 }
 0x45f   :  { %v454_v17 = vpop.permute.xlu0 %453 }
 0x460   :  { %2122 = vmatmul.mubr.msk.bf16.vlgmr.msra.gmra.mrb[4].mxu1 %vm87_vm10, %v454_v17 }
 0x461   :  { %2127 = vmatprep.mubr.msk.bf16.mxu1 %vm2456_vm0, %v2457_v8 }
 0x463   :  { %v698_v18 = vpop.permute.xlu0 %697 }
 0x464   :  { %2297 = vpush %v698_v18 }
 0x465   :  { %2299 = vpush %v715_v0 }
 0x467   :  { %v788_v19 = vpop.permute.xlu0 %787 }
 0x468   :  { %2301 = vpush %v788_v19 }
 0x495   :  { %s2743_s16 = spop %2297 }
 0x496   :  { %s2300_s17 = spop %2299  ;;  %v700_v10 = vstv %s2743_s16  ;;  %s2482_s16 = smov [#allocation2]  }
 0x497   :  { %v717_v20 = vstv %s2300_s17  ;;  %s1932_s17 = sshll.u32 %s2482_s16, 4  ;;  %s1933_s17 = int_to_ptr.vmem [resolvable:$true] %s1932_s17 }
 0x498   :  { %v719_v21 = vmul.f32 %v717_v20, %v2721_v63  ;;  %p2435_p1 = scmp.lt.s32.totalorder %s1933_s17, %s1933_s17 }
 0x499   :  { %s2302_s18 = spop %2301 }
 0x49a   :  { %724 = vrot.lane.b32.xlu0 %v719_v21, %s2459_s0 }
 0x49e   :  { %543 = vrot.lane.b32.xlu0 %v538_v23, %s2460_s4 }
 0x4ba   :  { %v595_v26 = vpop.permute.xlu0 %594  ;;  %v506_v27 = vpop.permute.xlu1 %505 }
 0x4bb   :  { %v597_v28 = vmul.f32 %v1942_v25, %v595_v26  ;;  %v508_v30 = vmul.f32 %v1942_v25, %v506_v27 }
 0x4bd   :  { %v598_v31 = vsel %vm85_vm9, %v597_v28, 0.0  ;;  %v509_v33 = vsel %vm85_vm9, %v508_v30, 0.0 }
 0x4be   :  { %v599_v34 = vrot.slane %v598_v31, 4  ;;  %v510_v35 = vrot.slane %v509_v33, 4  ;;  %v541_v36 = vpop.permute.xlu0 %540 }
 0x4bf   :  { %v551_v37 = vsel %vm549_vm12, %v541_v36, 0  ;;  %v685_v38 = vpop.permute.xlu1 %684 }
 0x4c0   :  { %v600_v39 = vadd.f32 %v599_v34, %v598_v31  ;;  %v511_v40 = vadd.f32 %v510_v35, %v509_v33  ;;  %2126 = vmatpush3.bf16.msra.mxu1 %v551_v37  ;;  %v687_v29 = vmul.f32 %v1942_v25, %v685_v38 }
 0x4c1   :  { %2137 = vmatprep.subr.bf16.mxu1 %v2457_v8 }
 0x4c2   :  { %v601_v4 = vrot.slane %v600_v39, 2  ;;  %v512_v41 = vrot.slane %v511_v40, 2  ;;  %v688_v42 = vsel %vm85_vm9, %v687_v29, 0.0  ;;  %v2757_v43 = vpop.permute.xlu0 %721 }
 0x4c3   :  { %v689_v44 = vrot.slane %v688_v42, 4 }
 0x4c4   :  { %v602_v45 = vadd.f32 %v601_v4, %v600_v39  ;;  %v513_v3 = vadd.f32 %v512_v41, %v511_v40  ;;  %v775_v46 = vpop.permute.xlu1 %774 }
 0x4c5   :  { %v690_v47 = vadd.f32 %v689_v44, %v688_v42  ;;  %v777_v13 = vmul.f32 %v1942_v25, %v775_v46 }
 0x4c6   :  { %v603_v48 = vrot.slane %v602_v45, 1  ;;  %v514_v49 = vrot.slane %v513_v3, 1  ;;  %v805_v51 = vpop.permute.xlu0 %804 }
 0x4c7   :  { %v691_v52 = vrot.slane %v690_v47, 2  ;;  %2303 = vpush %v805_v51  ;;  %v778_v16 = vsel %vm85_vm9, %v777_v13, 0.0 }
 0x4c8   :  { %v604_v53 = vadd.f32 %v603_v48, %v602_v45  ;;  %v515_v54 = vadd.f32 %v514_v49, %v513_v3  ;;  %v632_v55 = vpop.permute.xlu1 %631  ;;  %v779_v17 = vrot.slane %v778_v16, 4  ;;  %v731_v49 = vsel %vm549_vm12, %v2757_v43, 0 }
 0x4c9   :  { %v692_v56 = vadd.f32 %v691_v52, %v690_v47  ;;  %v641_v57 = vsel %vm549_vm12, %v632_v55, 0 }
 0x4ca   :  { %v605_v58 = vsub.f32 %v595_v26, %v604_v53  ;;  %v516_v59 = vsub.f32 %v506_v27, %v515_v54  ;;  %2132 = vmatpush3.bf16.msra.mxu0 %v641_v57  ;;  %v780_v0 = vadd.f32 %v779_v17, %v778_v16  ;;  %v790_v26 = vstv %s2302_s18 }
 0x4cb   :  { %v693_v1 = vrot.slane %v692_v56, 1  ;;  %2143 = vmatprep.subr.bf16.mxu0 %v2457_v8  ;;  %v1964_v16 = vmul.f32 -1.442695, %v2649_v50 }
 0x4cc   :  { %v606_v2 = vmax.f32 %v605_v58, 0.0  ;;  %v517_v5 = vmax.f32 %v516_v59, 0.0  ;;  %v781_v18 = vrot.slane %v780_v0, 2  ;;  %v812_v45 = vpop.permute.xlu1 %811 }
 0x4cd   :  { %v694_v6 = vadd.f32 %v693_v1, %v692_v56  ;;  %v821_v51 = vsel %vm549_vm12, %v812_v45, 0 }
 0x4ce   :  { %v612_v7 = vmul.f32 %v610_v62, %v606_v2  ;;  %v522_v61 = vmul.f32 %v520_v60, %v517_v5  ;;  %v782_v19 = vadd.f32 %v781_v18, %v780_v0 }
 0x4cf   :  { %v695_v9 = vsub.f32 %v685_v38, %v694_v6 }
 0x4d0   :  { %v783_v20 = vrot.slane %v782_v19, 1  ;;  %v613_v28 = vmul.f32 1.442695, %v612_v7  ;;  %v523_v25 = vmul.f32 1.442695, %v522_v61  ;;  %v635_v53 = vpop.permute.xlu1 %634 }
 0x4d1   :  { %v696_v11 = vmax.f32 %v695_v9, 0.0 }
 0x4d2   :  { %v784_v21 = vadd.f32 %v783_v20, %v782_v19  ;;  %2384 = vpow2.f32 %v613_v28 }
 0x4d3   :  { %v702_v12 = vmul.f32 %v700_v10, %v696_v11  ;;  %2386 = vpow2.f32 %v523_v25 }
 0x4d4   :  { %v785_v22 = vsub.f32 %v775_v46, %v784_v21 }
 0x4d5   :  { %v703_v30 = vmul.f32 1.442695, %v702_v12 }
 0x4d6   :  { %v786_v23 = vmax.f32 %v785_v22, 0.0 }
 0x4d7   :  { %2388 = vpow2.f32 %v703_v30 }
 0x4d8   :  { %v792_v27 = vmul.f32 %v790_v26, %v786_v23 }
 0x4da   :  { %v793_v31 = vmul.f32 1.442695, %v792_v27 }
 0x4dc   :  { %2390 = vpow2.f32 %v793_v31 }
 0x4dd   :  { %2392 = vpow2.f32 %v1964_v16 }
 0x4f8   :  { %s2304_s19 = spop %2303 }
 0x4f9   :  { %v807_v14 = vstv %s2304_s19 }
 0x4fa   :  { %v809_v15 = vmul.f32 %v807_v14, %v2721_v63  ;;  %v2385_v63 = vpop.eup %2384 }
 0x4fb   :  { %v2387_v33 = vpop.eup %2386  ;;  %v615_v38 = vsel %vm2697_vm8, %v2385_v63, 0.0 }
 0x4fc   :  { %814 = vrot.lane.b32.xlu1 %v809_v15, %s2474_s15  ;;  %v2389_v34 = vpop.eup %2388  ;;  %v525_v37 = vsel %vm2697_vm8, %v2387_v33, 0.0  ;;  %v2350_v33 = vld [vmem:[%s3028_s5] sm:$0xff]  }
 0x4fd   :  { %v2391_v35 = vpop.eup %2390  ;;  %v705_v39 = vsel %vm2697_vm8, %v2389_v34, 0.0  ;;  %v2351_v34 = vld [vmem:[%s3028_s5 + $0x8] sm:$0xff]  }
 0x4fe   :  { %v795_v40 = vsel %vm2697_vm8, %v2391_v35, 0.0  ;;  %v2393_v17 = vpop.eup %2392  ;;  %v2353_v35 = vld [vmem:[%s3028_s5 + $0x18] sm:$0xff]  }
 0x4ff   :  { %v882_v0 = vadd.f32 1.0, %v2393_v17 }
 0x501   :  { %2394 = vrcp.f32 %v882_v0 }
 0x50b   :  { %v2395_v20 = vpop.eup %2394 }
 0x50c   :  { %v725_v2 = vpop.permute.xlu0 %724  ;;  %v885_v28 = vmul.f32 %v2395_v20, %v2649_v50  ;;  %v2352_v50 = vld [vmem:[%s3028_s5 + $0x10] sm:$0xff]  }
 0x510   :  { %v544_v18 = vpop.permute.xlu0 %543 }
 0x533   :  { %v495_v36 = vpop.f32.mrb[4].mxu1 }
 0x534   :  { %v526_v29 = vmul.f32 %v525_v37, %v495_v36  ;;  %v616_v4 = vmul.f32 %v615_v38, %v495_v36  ;;  %v706_v41 = vmul.f32 %v705_v39, %v495_v36  ;;  %v796_v42 = vmul.f32 %v795_v40, %v495_v36  ;;  %v2123_v44 = vpop.f32.mrb[5].mxu1  ;;  %v1965_v40 = vld [vmem:[%s3026_s3 + $0x6] ss:$0 sm:$0xff] }
 0x535   :  { %v498_v3 = vpop.f32.mrb[6].mxu1 }
 0x536   :  { %v527_v46 = vpack.c.bf16 %v526_v29, %v526_v29  ;;  %v617_v47 = vpack.c.bf16 %v616_v4, %v616_v4  ;;  %v2124_v48 = vpop.f32.mrb[7].mxu1  ;;  %v707_v52 = vpack.c.bf16 %v706_v41, %v706_v41  ;;  %v797_v43 = vpack.c.bf16 %v796_v42, %v796_v42 }
 0x538   :  { %2128 = vmatmul.mubr.msk.bf16.vlgmr.msra.gmra.mrb[8].mxu1 %vm85_vm9, %v527_v46  ;;  %2134 = vmatmul.mubr.msk.bf16.vlgmr.msra.gmra.mrb[4].mxu0 %vm85_vm9, %v617_v47 }
 0x539   :  { %2138 = vmatpush3.bf16.msra.mxu1 %v731_v49  ;;  %2144 = vmatpush3.bf16.msra.mxu0 %v821_v51  ;;  %v2354_v49 = vld [vmem:[%s3029_s6] sm:$0xff]   ;;  %v2355_v51 = vld [vmem:[%s3029_s6 + $0x8] sm:$0xff]  }
 0x53a   :  { %2139 = vmatprep.mubr.msk.bf16.mxu1 %vm2456_vm0, %v2457_v8  ;;  %2145 = vmatprep.mubr.msk.bf16.mxu0 %vm2456_vm0, %v2457_v8 }
 0x53b   :  { %2149 = vmatprep.subr.bf16.mxu1 %v2457_v8  ;;  %2161 = vmatprep.subr.bf16.mxu0 %v2457_v8 }
 0x540   :  { %2140 = vmatmul.mubr.msk.bf16.vlgmr.msra.gmra.mrb[12].mxu1 %vm85_vm9, %v707_v52  ;;  %2146 = vmatmul.mubr.msk.bf16.vlgmr.msra.gmra.mrb[8].mxu0 %vm85_vm9, %v797_v43 }
 0x541   :  { %2157 = vmatprep.mubr.msk.bf16.mxu1 %vm2456_vm0, %v2457_v8  ;;  %2165 = vmatprep.mubr.msk.bf16.mxu0 %vm2456_vm0, %v2457_v8 }
 0x542   :  { %2150 = vmatpush3.bf16.msra.mxu1 %v2350_v33  ;;  %2162 = vmatpush3.bf16.msra.mxu0 %v2354_v49 }
 0x543   :  { %2151 = vmatprep.subr.bf16.mxu1 %v2457_v8  ;;  %2163 = vmatprep.subr.bf16.mxu0 %v2457_v8 }
 0x546   :  { %2152 = vmatpush3.bf16.msra.mxu1 %v2351_v34  ;;  %2164 = vmatpush3.bf16.msra.mxu0 %v2355_v51 }
 0x547   :  { %2153 = vmatprep.subr.bf16.mxu1 %v2457_v8  ;;  %2169 = vmatprep.subr.bf16.mxu0 %v2457_v8 }
 0x54a   :  { %2154 = vmatpush3.bf16.msra.mxu1 %v2352_v50 }
 0x54b   :  { %2155 = vmatprep.subr.bf16.mxu1 %v2457_v8 }
 0x54e   :  { %2156 = vmatpush3.bf16.msra.mxu1 %v2353_v35 }
 0x54f   :  { %2181 = vmatprep.subr.bf16.mxu1 %v2457_v8 }
 0x56e   :  { %v815_v5 = vpop.permute.xlu1 %814 }
 0x60b   :  { %v587_v54 = vpop.f32.mrb[8].mxu1  ;;  %v677_v55 = vpop.f32.mrb[4].mxu0 }
 0x60c   :  { %v678_v56 = vadd.f32 %v677_v55, %v635_v53  ;;  %v2129_v57 = vpop.f32.mrb[9].mxu1  ;;  %v2135_v58 = vpop.f32.mrb[5].mxu0  ;;  %v588_v21 = vadd.f32 %v587_v54, %v544_v18  ;;  %v1971_v54 = vld [vmem:[%s3026_s3 + $0x1] ss:$0 sm:$0xff] }
 0x60d   :  { %v590_v59 = vpop.f32.mrb[10].mxu1  ;;  %v680_v60 = vpop.f32.mrb[6].mxu0  ;;  %v2356_v58 = vld [vmem:[%s3030_s7] sm:$0xff]  }
 0x60e   :  { %v2130_v62 = vpop.f32.mrb[11].mxu1  ;;  %864 = vrot.lane.b32.xlu1 %v678_v56, %s2474_s15  ;;  %v2136_v1 = vpop.f32.mrb[7].mxu0  ;;  %v2357_v59 = vld [vmem:[%s3030_s7 + $0x8] sm:$0xff]   ;;  %v2358_v60 = vld [vmem:[%s3030_s7 + $0x10] sm:$0xff]  }
 0x60f   :  { %v2359_v62 = vld [vmem:[%s3030_s7 + $0x18] sm:$0xff]  }
 0x613   :  { %v767_v6 = vpop.f32.mrb[12].mxu1  ;;  %v857_v7 = vpop.f32.mrb[8].mxu0 }
 0x614   :  { %v768_v61 = vadd.f32 %v767_v6, %v725_v2  ;;  %v858_v9 = vadd.f32 %v857_v7, %v815_v5  ;;  %v2141_v10 = vpop.f32.mrb[13].mxu1  ;;  %v2147_v11 = vpop.f32.mrb[9].mxu0 }
 0x615   :  { %v770_v12 = vpop.f32.mrb[14].mxu1  ;;  %v860_v13 = vpop.f32.mrb[10].mxu0 }
 0x616   :  { %868 = vrot.lane.b32.xlu0 %v768_v61, %s2459_s0  ;;  %v2142_v14 = vpop.f32.mrb[15].mxu1  ;;  %872 = vrot.lane.b32.xlu1 %v858_v9, %s2473_s30  ;;  %v2148_v15 = vpop.f32.mrb[11].mxu0  ;;  %s2476_s30 = smov 120  }
 0x617   :  { %v74_v15 = vld [vmem:[%s3024_s1] sm:$0xff] }
 0x680   :  { %v865_v19 = vpop.permute.xlu1 %864 }
 0x681   :  { %v875_v22 = vsel %vm87_vm10, %v588_v21, %v865_v19 }
 0x688   :  { %v869_v23 = vpop.permute.xlu0 %868  ;;  %v873_v26 = vpop.permute.xlu1 %872 }
 0x689   :  { %v876_v27 = vsel %vm177_vm2, %v875_v22, %v869_v23  ;;  %v2360_v22 = vld [vmem:[%s3032_s9] sm:$0xff]   ;;  %v2361_v23 = vld [vmem:[%s3032_s9 + $0x8] sm:$0xff]   ;;  %s2477_s9 = smov 24  }
 0x68a   :  { %v878_v25 = vsel %vm877_vm13, %v876_v27, %v873_v26 }
 0x68b   :  { %v886_v30 = vmul.f32 %v885_v28, %v878_v25 }
 0x68d   :  { %v887_v31 = vmul.f32 %v886_v30, %v886_v30 }
 0x68f   :  { %v888_v63 = vsel %vm277_vm4, %v887_v31, 0.0 }
 0x690   :  { %889 = vadd.xlane.f32.xlu0 %v888_v63 }
 0x71d   :  { %v890_v36 = vpop.xlane.xlu0 %889 }
 0x71e   :  { %v892_v37 = vmul.f32 0.015625, %v890_v36  ;;  %v1981_v36 = vld [vmem:[%s3031_s8] ss:$0 sm:$0xff] }
 0x720   :  { %v893_v38 = vadd.f32 1e-05, %v892_v37 }
 0x722   :  { %2396 = vrsqrt.f32 %v893_v38 }
 0x72c   :  { %v2397_v39 = vpop.eup %2396 }
 0x72d   :  { %v895_v29 = vmul.f32 %v2397_v39, %v886_v30 }
 0x72f   :  { %v901_v4 = vmul.f32 %v1965_v40, %v895_v29 }
 0x731   :  { %v902_v41 = vpack.c.bf16 %v901_v4, %v901_v4 }
 0x733   :  { %2158 = vmatmul.mubr.msk.bf16.vlgmr.msra.gmra.mrb[16].mxu1 %vm277_vm4, %v902_v41 }
 0x734   :  { %2185 = vmatprep.mubr.msk.bf16.mxu1 %vm2456_vm0, %v2457_v8  ;;  %2182 = vmatpush3.bf16.msra.mxu1 %v2360_v22 }
 0x735   :  { %2183 = vmatprep.subr.bf16.mxu1 %v2457_v8 }
 0x738   :  { %2184 = vmatpush3.bf16.msra.mxu1 %v2361_v23 }
 0x739   :  { %2189 = vmatprep.subr.bf16.mxu1 %v2457_v8 }
 0x806   :  { %v972_v42 = vpop.f32.mrb[16].mxu1 }
 0x807   :  { %v973_v44 = vadd.f32 %v972_v42, %v2620_v32  ;;  %v2159_v45 = vpop.f32.mrb[17].mxu1 }
 0x808   :  { %v975_v3 = vpop.f32.mrb[18].mxu1 }
 0x809   :  { %v2160_v46 = vpop.f32.mrb[19].mxu1  ;;  %v979_v47 = vmul.f32 %v973_v44, %v973_v44 }
 0x80b   :  { %v980_v48 = vsel %vm177_vm2, %v979_v47, 0.0 }
 0x80c   :  { %981 = vadd.xlane.f32.xlu1 %v980_v48 }
 0x899   :  { %v982_v32 = vpop.xlane.xlu1 %981 }
 0x89a   :  { %v983_v52 = vmul.f32 0.03125, %v982_v32 }
 0x89c   :  { %v984_v43 = vadd.f32 1e-05, %v983_v52 }
 0x89e   :  { %2398 = vrsqrt.f32 %v984_v43 }
 0x8a8   :  { %v2399_v53 = vpop.eup %2398 }
 0x8a9   :  { %v986_v55 = vmul.f32 %v2399_v53, %v973_v44 }
 0x8ab   :  { %v991_v56 = vmul.f32 %v1971_v54, %v986_v55 }
 0x8ad   :  { %v992_v57 = vpack.c.bf16 %v991_v56, %v991_v56 }
 0x8af   :  { %2166 = vmatmul.mubr.msk.bf16.vlgmr.msra.gmra.mrb[12].mxu0 %vm177_vm2, %v992_v57 }
 0x8b0   :  { %2177 = vmatprep.mubr.msk.bf16.mxu0 %vm2456_vm0, %v2457_v8  ;;  %2170 = vmatpush3.bf16.msra.mxu0 %v2356_v58 }
 0x8b1   :  { %2171 = vmatprep.subr.bf16.mxu0 %v2457_v8 }
 0x8b4   :  { %2172 = vmatpush3.bf16.msra.mxu0 %v2357_v59 }
 0x8b5   :  { %2173 = vmatprep.subr.bf16.mxu0 %v2457_v8 }
 0x8b8   :  { %2174 = vmatpush3.bf16.msra.mxu0 %v2358_v60 }
 0x8b9   :  { %2175 = vmatprep.subr.bf16.mxu0 %v2457_v8 }
 0x8bc   :  { %2176 = vmatpush3.bf16.msra.mxu0 %v2359_v62 }
 0x8bd   :  { %2195 = vmatprep.subr.bf16.mxu0 %v2457_v8 }
 0x982   :  { %v1046_v1 = vpop.f32.mrb[12].mxu0 }
 0x983   :  { %1060 = vrot.lane.b32.xlu0 %v1046_v1, %s2460_s4  ;;  %v2167_v2 = vpop.f32.mrb[13].mxu0  ;;  %v1975_v7 = vmul.f32 -1.442695, %v1046_v1 }
 0x984   :  { %v1049_v5 = vpop.f32.mrb[14].mxu0 }
 0x985   :  { %v2168_v6 = vpop.f32.mrb[15].mxu0  ;;  %2400 = vpow2.f32 %v1975_v7 }
 0x987   :  { %76 = vrot.lane.b32.xlu0 %v74_v15, %s2475_s2 }
 0x98b   :  { %79 = vrot.lane.b32.xlu0 %v74_v15, %s2474_s15 }
 0x98f   :  { %v2401_v61 = vpop.eup %2400 }
 0x990   :  { %v1055_v9 = vadd.f32 1.0, %v2401_v61 }
 0x992   :  { %2402 = vrcp.f32 %v1055_v9 }
 0x99c   :  { %v2403_v10 = vpop.eup %2402 }
 0x99d   :  { %v1058_v11 = vmul.f32 %v2403_v10, %v1046_v1 }
 0x9f5   :  { %v1061_v12 = vpop.permute.xlu0 %1060 }
 0x9f6   :  { %v1063_v13 = vmul.f32 %v1061_v12, %v1058_v11 }
 0x9f8   :  { %v1064_v14 = vpack.c.bf16 %v1063_v13, %v1063_v13 }
 0x9f9   :  { %v77_v27 = vpop.permute.xlu0 %76 }
 0x9fa   :  { %2178 = vmatmul.mubr.msk.bf16.vlgmr.msra.gmra.mrb[16].mxu0 %vm277_vm4, %v1064_v14  ;;  %v86_v34 = vsel %vm85_vm9, %v74_v15, %v77_v27 }
 0x9fb   :  { %2197 = vmatprep.mubr.msk.bf16.mxu0 %vm2456_vm0, %v2457_v8 }
 0x9fd   :  { %v80_v31 = vpop.permute.xlu0 %79 }
 0x9fe   :  { %v88_v47 = vsel %vm87_vm10, %v86_v34, %v80_v31 }
 0xacd   :  { %v1134_v16 = vpop.f32.mrb[16].mxu0 }
 0xace   :  { %v2863_v17 = vadd.f32 %v1134_v16, %v973_v44  ;;  %v2179_v0 = vpop.f32.mrb[17].mxu0 }
 0xacf   :  { %v1137_v18 = vpop.f32.mrb[18].mxu0 }
 0xad0   :  { %v2180_v19 = vpop.f32.mrb[19].mxu0  ;;  %v1141_v20 = vmul.f32 %v2863_v17, %v2863_v17 }
 0xad2   :  { %v1142_v21 = vsel %vm177_vm2, %v1141_v20, 0.0 }
 0xad3   :  { %1143 = vadd.xlane.f32.xlu1 %v1142_v21 }
 0xae4   :  { %91 = vrot.lane.b32.xlu1 %v74_v15, %s2476_s30 }
 0xb60   :  { %v1144_v26 = vpop.xlane.xlu1 %1143 }
 0xb61   :  { %v1145_v28 = vmul.f32 0.03125, %v1144_v26 }
 0xb63   :  { %v1146_v25 = vadd.f32 1e-05, %v1145_v28 }
 0xb64   :  { %v92_v30 = vpop.permute.xlu1 %91 }
 0xb65   :  { %2404 = vrsqrt.f32 %v1146_v25  ;;  %v94_v63 = vsel %vm85_vm9, %v92_v30, %v74_v15 }
 0xb66   :  { %1231 = vrot.lane.b32.xlu1 %v94_v63, %s2462_s29  ;;  %v95_v33 = vsel %vm87_vm10, %v94_v63, %v77_v27 }
 0xb67   :  { %v96_v50 = vsel %vm89_vm14, %v95_v33, %v80_v31 }
 0xb68   :  { %1216 = vrot.lane.b32.xlu0 %v96_v50, %s2460_s4 }
 0xb6a   :  { %1226 = vrot.lane.b32.xlu1 %v86_v34, %s2459_s0  ;;  %s2478_s0 = smov 88  }
 0xb6e   :  { %82 = vrot.lane.b32.xlu1 %v74_v15, %s2477_s9 }
 0xb6f   :  { %v2405_v35 = vpop.eup %2404 }
 0xb70   :  { %v1148_v37 = vmul.f32 %v2405_v35, %v2863_v17 }
 0xb72   :  { %v1153_v38 = vmul.f32 %v1981_v36, %v1148_v37 }
 0xb74   :  { %v1154_v39 = vpack.c.bf16 %v1153_v38, %v1153_v38 }
 0xb76   :  { %2186 = vmatmul.mubr.msk.bf16.vlgmr.msra.gmra.mrb[20].mxu1 %vm177_vm2, %v1154_v39 }
 0xb77   :  { %2191 = vmatprep.mubr.msk.bf16.mxu1 %vm2456_vm0, %v2457_v8 }
 0xbd8   :  { %v1232_v40 = vpop.permute.xlu1 %1231 }
 0xbda   :  { %v1217_v42 = vpop.permute.xlu0 %1216 }
 0xbdc   :  { %v1227_v46 = vpop.permute.xlu1 %1226 }
 0xbe0   :  { %v83_v48 = vpop.permute.xlu1 %82 }
 0xbe1   :  { %v90_v52 = vsel %vm89_vm14, %v88_v47, %v83_v48 }
 0xc49   :  { %v2892_v29 = vpop.f32.mrb[20].mxu1 }
 0xc4a   :  { %v2187_v4 = vpop.f32.mrb[21].mxu1  ;;  %v1234_v41 = vmul.f32 %v1232_v40, %v2892_v29  ;;  %v1219_v3 = vmul.f32 %v1217_v42, %v2892_v29  ;;  %v1229_v49 = vmul.f32 %v1227_v46, %v2892_v29  ;;  %v1214_v53 = vmul.f32 %v2892_v29, %v90_v52 }
 0xc4b   :  { %v1211_v44 = vpop.f32.mrb[22].mxu1  ;;  %v1242_v52 = vpack.c.bf16 %v2892_v29, %v2892_v29 }
 0xc4c   :  { %v2188_v45 = vpop.f32.mrb[23].mxu1  ;;  %1236 = vrot.lane.b32.xlu0 %v1234_v41, %s2460_s4 }
 0xc50   :  { %1221 = vrot.lane.b32.xlu0 %v1219_v3, %s2460_s4 }
 0xcbe   :  { %v1237_v51 = vpop.permute.xlu0 %1236 }
 0xcbf   :  { %v1239_v32 = vadd.f32 %v1237_v51, %v1229_v49 }
 0xcc1   :  { %v1241_v43 = vpack.c.bf16 %v1239_v32, %v1239_v32 }
 0xcc2   :  { %v1222_v54 = vpop.permute.xlu0 %1221 }
 0xcc3   :  { %v1224_v55 = vadd.f32 %v1222_v54, %v1214_v53  ;;  %1244 = vrot.lane.b32.xlu1 %v1241_v43, %s2462_s29  ;;  %s2480_s29 = smov 80  }
 0xcc5   :  { %v1240_v56 = vpack.c.bf16 %v1224_v55, %v1224_v55 }
 0xcc7   :  { %1460 = vrot.lane.b32.xlu1 %v1241_v43, %s2478_s0  ;;  %1356 = vrot.lane.b32.xlu0 %v1240_v56, %s2476_s30 }
 0xccb   :  { %1570 = vrot.lane.b32.xlu1 %v1240_v56, %s2479_s20  ;;  %1458 = vrot.lane.b32.xlu0 %v1240_v56, %s2469_s24  ;;  %s2481_s24 = smov 72  }
 0xd35   :  { %v1245_v57 = vpop.permute.xlu1 %1244 }
 0xd36   :  { %v1250_v58 = vsel %vm85_vm9, %v1245_v57, 0 }
 0xd37   :  { %2190 = vmatpush3.bf16.xpose.msra.mxu1 %v1250_v58 }
 0xd38   :  { %2201 = vmatprep.subr.bf16.mxu1 %v2457_v8 }
 0xd39   :  { %v1461_v59 = vpop.permute.xlu1 %1460  ;;  %v1357_v60 = vpop.permute.xlu0 %1356 }
 0xd3a   :  { %v1466_v62 = vsel %vm85_vm9, %v1461_v59, 0 }
 0xd3d   :  { %v1459_v1 = vpop.permute.xlu0 %1458  ;;  %v1571_v2 = vpop.permute.xlu1 %1570 }
 0xd3e   :  { %2192 = vmatmul.mubr.msk.bf16.vlgmr.msra.gmra.mrb[24].mxu1 %vm85_vm9, %v1240_v56 }
 0xd3f   :  { %2202 = vmatpush3.bf16.xpose.msra.mxu1 %v1250_v58  ;;  %2203 = vmatprep.mubr.msk.bf16.mxu1 %vm2456_vm0, %v2457_v8 }
 0xd40   :  { %2213 = vmatprep.subr.bf16.mxu1 %v2457_v8 }
 0xd46   :  { %2204 = vmatmul.mubr.msk.bf16.vlgmr.msra.gmra.mrb[28].mxu1 %vm85_vm9, %v1357_v60 }
 0xd47   :  { %2214 = vmatpush3.bf16.xpose.msra.mxu1 %v1466_v62  ;;  %2215 = vmatprep.mubr.msk.bf16.mxu1 %vm2456_vm0, %v2457_v8 }
 0xd48   :  { %2225 = vmatprep.subr.bf16.mxu1 %v2457_v8 }
 0xd4e   :  { %2216 = vmatmul.mubr.msk.bf16.vlgmr.msra.gmra.mrb[32].mxu1 %vm85_vm9, %v1459_v1 }
 0xd4f   :  { %2226 = vmatpush3.bf16.xpose.msra.mxu1 %v1466_v62  ;;  %2227 = vmatprep.mubr.msk.bf16.mxu1 %vm2456_vm0, %v2457_v8 }
 0xd50   :  { %2237 = vmatprep.subr.bf16.mxu1 %v2457_v8 }
 0xd56   :  { %2228 = vmatmul.mubr.msk.bf16.vlgmr.msra.gmra.mrb[36].mxu1 %vm85_vm9, %v1571_v2 }
 0xd57   :  { %2241 = vmatprep.mubr.msk.bf16.mxu1 %vm2456_vm0, %v2457_v8 }
 0xe11   :  { %v1286_v5 = vpop.f32.mrb[24].mxu1 }
 0xe12   :  { %v1292_v6 = vmul.f32 0.35355338, %v1286_v5  ;;  %v2193_v7 = vpop.f32.mrb[25].mxu1 }
 0xe13   :  { %v1289_v61 = vpop.f32.mrb[26].mxu1 }
 0xe14   :  { %v2194_v9 = vpop.f32.mrb[27].mxu1  ;;  %v1293_v10 = vsel %vm2697_vm8, %v1292_v6, -1e+30 }
 0xe15   :  { %v1294_v11 = vsel %vm85_vm9, %v1293_v10, -inf }
 0xe16   :  { %1295 = vmax.xlane.f32.xlu0 %v1294_v11 }
 0xe19   :  { %v1395_v12 = vpop.f32.mrb[28].mxu1 }
 0xe1a   :  { %v1401_v13 = vmul.f32 0.35355338, %v1395_v12  ;;  %v2205_v14 = vpop.f32.mrb[29].mxu1 }
 0xe1b   :  { %v1398_v15 = vpop.f32.mrb[30].mxu1 }
 0xe1c   :  { %v2206_v16 = vpop.f32.mrb[31].mxu1  ;;  %v1402_v0 = vsel %vm2697_vm8, %v1401_v13, -1e+30 }
 0xe1d   :  { %v1403_v18 = vsel %vm85_vm9, %v1402_v0, -inf  ;;  %v2362_v16 = vld [vmem:[%s3033_s10] sm:$0xff]  }
 0xe1e   :  { %1404 = vmax.xlane.f32.xlu1 %v1403_v18  ;;  %2238 = vmatpush3.bf16.msra.mxu1 %v2362_v16 }
 0xe1f   :  { %2239 = vmatprep.subr.bf16.mxu1 %v2457_v8 }
 0xe21   :  { %v1502_v19 = vpop.f32.mrb[32].mxu1 }
 0xe22   :  { %v1508_v20 = vmul.f32 0.35355338, %v1502_v19  ;;  %v2217_v21 = vpop.f32.mrb[33].mxu1 }
 0xe23   :  { %v1505_v22 = vpop.f32.mrb[34].mxu1  ;;  %v2363_v21 = vld [vmem:[%s3033_s10 + $0x8] sm:$0xff]  }
 0xe24   :  { %v2218_v23 = vpop.f32.mrb[35].mxu1  ;;  %v1509_v26 = vsel %vm2697_vm8, %v1508_v20, -1e+30  ;;  %2240 = vmatpush3.bf16.msra.mxu1 %v2363_v21 }
 0xe25   :  { %v1510_v27 = vsel %vm85_vm9, %v1509_v26, -inf  ;;  %2253 = vmatprep.subr.bf16.mxu1 %v2457_v8 }
 0xe26   :  { %1511 = vmax.xlane.f32.xlu0 %v1510_v27 }
 0xe29   :  { %v1609_v28 = vpop.f32.mrb[36].mxu1 }
 0xe2a   :  { %v1615_v25 = vmul.f32 0.35355338, %v1609_v28  ;;  %v2229_v30 = vpop.f32.mrb[37].mxu1 }
 0xe2b   :  { %v1612_v31 = vpop.f32.mrb[38].mxu1 }
 0xe2c   :  { %v2230_v63 = vpop.f32.mrb[39].mxu1  ;;  %v1616_v33 = vsel %vm2697_vm8, %v1615_v25, -1e+30 }
 0xe2d   :  { %v1617_v34 = vsel %vm85_vm9, %v1616_v33, -inf }
 0xe2e   :  { %1618 = vmax.xlane.f32.xlu0 %v1617_v34 }
 0xea3   :  { %v1296_v50 = vpop.xlane.xlu0 %1295 }
 0xea4   :  { %v1297_v35 = vsub.f32 %v1293_v10, %v1296_v50 }
 0xea6   :  { %v1298_v36 = vmul.f32 1.442695, %v1297_v35 }
 0xea8   :  { %2406 = vpow2.f32 %v1298_v36 }
 0xeab   :  { %v1405_v37 = vpop.xlane.xlu1 %1404 }
 0xeac   :  { %v1406_v38 = vsub.f32 %v1402_v0, %v1405_v37 }
 0xeae   :  { %v1407_v39 = vmul.f32 1.442695, %v1406_v38 }
 0xeb0   :  { %2408 = vpow2.f32 %v1407_v39 }
 0xeb2   :  { %v2407_v40 = vpop.eup %2406 }
 0xeb3   :  { %v1512_v4 = vpop.xlane.xlu0 %1511  ;;  %v1300_v41 = vsel %vm85_vm9, %v2407_v40, 0.0 }
 0xeb4   :  { %v1513_v42 = vsub.f32 %v1509_v26, %v1512_v4  ;;  %1301 = vadd.xlane.f32.xlu0 %v1300_v41 }
 0xeb6   :  { %v1514_v44 = vmul.f32 1.442695, %v1513_v42 }
 0xeb8   :  { %2410 = vpow2.f32 %v1514_v44 }
 0xeba   :  { %v2409_v24 = vpop.eup %2408 }
 0xebb   :  { %v1619_v45 = vpop.xlane.xlu0 %1618  ;;  %v1409_v3 = vsel %vm85_vm9, %v2409_v24, 0.0 }
 0xebc   :  { %v1620_v46 = vsub.f32 %v1616_v33, %v1619_v45  ;;  %1410 = vadd.xlane.f32.xlu1 %v1409_v3  ;;  %v2365_v45 = vld [vmem:[%s3034_s11 + $0x8] sm:$0xff]  }
 0xebe   :  { %v1621_v47 = vmul.f32 1.442695, %v1620_v46 }
 0xec0   :  { %2412 = vpow2.f32 %v1621_v47 }
 0xec2   :  { %v2411_v48 = vpop.eup %2410 }
 0xec3   :  { %v1516_v49 = vsel %vm85_vm9, %v2411_v48, 0.0 }
 0xec4   :  { %1517 = vadd.xlane.f32.xlu0 %v1516_v49 }
 0xeca   :  { %v2413_v51 = vpop.eup %2412 }
 0xecb   :  { %v1623_v32 = vsel %vm85_vm9, %v2413_v51, 0.0 }
 0xecc   :  { %1624 = vadd.xlane.f32.xlu1 %v1623_v32 }
 0xeda   :  { %1307 = vrot.lane.b32.xlu0 %v1242_v52, %s2480_s29 }
 0xedd   :  { %1522 = vrot.lane.b32.xlu1 %v1242_v52, %s2481_s24  ;;  %v2366_v52 = vld [vmem:[%s3035_s12] sm:$0xff]  }
 0xf41   :  { %v1302_v43 = vpop.xlane.xlu0 %1301 }
 0xf42   :  { %2414 = vrcp.f32 %v1302_v43  ;;  %v2367_v43 = vld [vmem:[%s3035_s12 + $0x8] sm:$0xff]  }
 0xf49   :  { %v1411_v53 = vpop.xlane.xlu1 %1410 }
 0xf4a   :  { %2416 = vrcp.f32 %v1411_v53  ;;  %v2368_v53 = vld [vmem:[%s3035_s12 + $0x10] sm:$0xff]  }
 0xf4c   :  { %v2415_v54 = vpop.eup %2414 }
 0xf4d   :  { %v1304_v56 = vmul.f32 %v2415_v54, %v2407_v40  ;;  %v2369_v54 = vld [vmem:[%s3035_s12 + $0x18] sm:$0xff]  }
 0xf4f   :  { %v1305_v59 = vpack.c.bf16 %v1304_v56, %v1304_v56 }
 0xf51   :  { %v1518_v55 = vpop.xlane.xlu0 %1517 }
 0xf52   :  { %2418 = vrcp.f32 %v1518_v55 }
 0xf54   :  { %v2417_v29 = vpop.eup %2416 }
 0xf55   :  { %v1308_v57 = vpop.permute.xlu0 %1307  ;;  %v1413_v62 = vmul.f32 %v2417_v29, %v2409_v24  ;;  %v2364_v24 = vld [vmem:[%s3034_s11] sm:$0xff]  }
 0xf56   :  { %v1313_v58 = vsel %vm549_vm12, %v1308_v57, 0 }
 0xf57   :  { %2196 = vmatpush3.bf16.msra.mxu0 %v1313_v58  ;;  %v1414_v2 = vpack.c.bf16 %v1413_v62, %v1413_v62 }
 0xf58   :  { %2207 = vmatprep.subr.bf16.mxu0 %v2457_v8 }
 0xf59   :  { %v1625_v60 = vpop.xlane.xlu1 %1624 }
 0xf5a   :  { %2198 = vmatmul.mubr.msk.bf16.vlgmr.msra.gmra.mrb[20].mxu0 %vm85_vm9, %v1305_v59  ;;  %2420 = vrcp.f32 %v1625_v60 }
 0xf5b   :  { %2208 = vmatpush3.bf16.msra.mxu0 %v1313_v58  ;;  %2209 = vmatprep.mubr.msk.bf16.mxu0 %vm2456_vm0, %v2457_v8 }
 0xf5c   :  { %2219 = vmatprep.subr.bf16.mxu0 %v2457_v8  ;;  %v2419_v5 = vpop.eup %2418 }
 0xf5d   :  { %v1523_v1 = vpop.permute.xlu1 %1522  ;;  %v1520_v7 = vmul.f32 %v2419_v5, %v2411_v48  ;;  %v1996_v48 = vld [vmem:[%s3031_s8 + $0x1] ss:$0 sm:$0xff] }
 0xf5e   :  { %v1528_v6 = vsel %vm549_vm12, %v1523_v1, 0 }
 0xf5f   :  { %v1521_v61 = vpack.c.bf16 %v1520_v7, %v1520_v7 }
 0xf62   :  { %2210 = vmatmul.mubr.msk.bf16.vlgmr.msra.gmra.mrb[24].mxu0 %vm85_vm9, %v1414_v2 }
 0xf63   :  { %2220 = vmatpush3.bf16.msra.mxu0 %v1528_v6  ;;  %2221 = vmatprep.mubr.msk.bf16.mxu0 %vm2456_vm0, %v2457_v8 }
 0xf64   :  { %2231 = vmatprep.subr.bf16.mxu0 %v2457_v8  ;;  %v2421_v9 = vpop.eup %2420 }
 0xf65   :  { %v1627_v10 = vmul.f32 %v2421_v9, %v2413_v51 }
 0xf67   :  { %v1628_v11 = vpack.c.bf16 %v1627_v10, %v1627_v10 }
 0xf6a   :  { %2222 = vmatmul.mubr.msk.bf16.vlgmr.msra.gmra.mrb[28].mxu0 %vm85_vm9, %v1521_v61 }
 0xf6b   :  { %2232 = vmatpush3.bf16.msra.mxu0 %v1528_v6  ;;  %2233 = vmatprep.mubr.msk.bf16.mxu0 %vm2456_vm0, %v2457_v8 }
 0xf6c   :  { %2245 = vmatprep.subr.bf16.mxu0 %v2457_v8 }
 0xf72   :  { %2234 = vmatmul.mubr.msk.bf16.vlgmr.msra.gmra.mrb[32].mxu0 %vm85_vm9, %v1628_v11 }
 0xf73   :  { %2249 = vmatprep.mubr.msk.bf16.mxu0 %vm2456_vm0, %v2457_v8  ;;  %2246 = vmatpush3.bf16.msra.mxu0 %v2364_v24 }
 0xf74   :  { %2247 = vmatprep.subr.bf16.mxu0 %v2457_v8 }
 0xf77   :  { %2248 = vmatpush3.bf16.msra.mxu0 %v2365_v45 }
0x102d   :  { %v1349_v12 = vpop.f32.mrb[20].mxu0 }
0x102e   :  { %v2199_v13 = vpop.f32.mrb[21].mxu0 }
0x102f   :  { %v1352_v14 = vpop.f32.mrb[22].mxu0 }
0x1030   :  { %v2200_v15 = vpop.f32.mrb[23].mxu0 }
0x1035   :  { %v1452_v0 = vpop.f32.mrb[24].mxu0 }
0x1036   :  { %1673 = vrot.lane.b32.xlu1 %v1452_v0, %s2475_s2  ;;  %v2211_v18 = vpop.f32.mrb[25].mxu0  ;;  %v2006_v0 = vld [vmem:[%s3036_s13] ss:$0 sm:$0xff] }
0x1037   :  { %v1455_v19 = vpop.f32.mrb[26].mxu0 }
0x1038   :  { %v2212_v20 = vpop.f32.mrb[27].mxu0 }
0x103d   :  { %v1564_v22 = vpop.f32.mrb[28].mxu0 }
0x103e   :  { %1677 = vrot.lane.b32.xlu1 %v1564_v22, %s2474_s15  ;;  %v2223_v23 = vpop.f32.mrb[29].mxu0 }
0x103f   :  { %v1567_v26 = vpop.f32.mrb[30].mxu0 }
0x1040   :  { %v2224_v27 = vpop.f32.mrb[31].mxu0 }
0x1045   :  { %v1666_v28 = vpop.f32.mrb[32].mxu0 }
0x1046   :  { %1681 = vrot.lane.b32.xlu0 %v1666_v28, %s2477_s9  ;;  %v2235_v25 = vpop.f32.mrb[33].mxu0  ;;  %s2430_s9 = scalar_lea.vmem %s1933_s17, 128 }
0x1047   :  { %v1669_v30 = vpop.f32.mrb[34].mxu0  ;;  %p2431_p0 = scmp.ne.s32.totalorder %s1933_s17, %s2430_s9  ;;  %p2436_p2 = scmp.lt.s32.totalorder %s2430_s9, %s2430_s9 }
0x1048   :  { %v2236_v31 = vpop.f32.mrb[35].mxu0 }
0x1049   :  { %p2437_p3 = por %p2436_p2, %p2435_p1 }
0x104b   :  { %p2438_p4 = pnand %p2437_p3, %p2431_p0 }
0x10a8   :  { %v1674_v63 = vpop.permute.xlu1 %1673 }
0x10a9   :  { %v1684_v34 = vsel %vm85_vm9, %v1349_v12, %v1674_v63 }
0x10b0   :  { %v1678_v33 = vpop.permute.xlu1 %1677 }
0x10b1   :  { %v1685_v50 = vsel %vm87_vm10, %v1684_v34, %v1678_v33 }
0x10b8   :  { %v1682_v35 = vpop.permute.xlu0 %1681 }
0x10b9   :  { %v1686_v36 = vsel %vm89_vm14, %v1685_v50, %v1682_v35 }
0x10ba   :  { %v1687_v37 = vpack.c.bf16 %v1686_v36, %v1686_v36 }
0x10bc   :  { %2242 = vmatmul.mubr.msk.bf16.vlgmr.msra.gmra.mrb[40].mxu1 %vm177_vm2, %v1687_v37 }
0x10bd   :  { %2261 = vmatprep.mubr.msk.bf16.mxu1 %vm2456_vm0, %v2457_v8  ;;  %2254 = vmatpush3.bf16.msra.mxu1 %v2366_v52 }
0x10be   :  { %2255 = vmatprep.subr.bf16.mxu1 %v2457_v8 }
0x10c1   :  { %2256 = vmatpush3.bf16.msra.mxu1 %v2367_v43 }
0x10c2   :  { %2257 = vmatprep.subr.bf16.mxu1 %v2457_v8 }
0x10c5   :  { %2258 = vmatpush3.bf16.msra.mxu1 %v2368_v53 }
0x10c6   :  { %2259 = vmatprep.subr.bf16.mxu1 %v2457_v8 }
0x10c9   :  { %2260 = vmatpush3.bf16.msra.mxu1 %v2369_v54 }
0x118f   :  { %v1741_v38 = vpop.f32.mrb[40].mxu1 }
0x1190   :  { %v1742_v39 = vadd.f32 %v1741_v38, %v2863_v17  ;;  %v2243_v40 = vpop.f32.mrb[41].mxu1 }
0x1191   :  { %v1744_v4 = vpop.f32.mrb[42].mxu1 }
0x1192   :  { %v2244_v41 = vpop.f32.mrb[43].mxu1  ;;  %v1748_v42 = vmul.f32 %v1742_v39, %v1742_v39 }
0x1194   :  { %v1749_v44 = vsel %vm177_vm2, %v1748_v42, 0.0 }
0x1195   :  { %1750 = vadd.xlane.f32.xlu1 %v1749_v44 }
0x1222   :  { %v1751_v17 = vpop.xlane.xlu1 %1750 }
0x1223   :  { %v1752_v3 = vmul.f32 0.03125, %v1751_v17 }
0x1225   :  { %v1753_v46 = vadd.f32 1e-05, %v1752_v3 }
0x1227   :  { %2422 = vrsqrt.f32 %v1753_v46 }
0x1231   :  { %v2423_v47 = vpop.eup %2422 }
0x1232   :  { %v1755_v49 = vmul.f32 %v2423_v47, %v1742_v39 }
0x1234   :  { %v1760_v51 = vmul.f32 %v1996_v48, %v1755_v49 }
0x1236   :  { %v1761_v32 = vpack.c.bf16 %v1760_v51, %v1760_v51 }
0x1238   :  { %2250 = vmatmul.mubr.msk.bf16.vlgmr.msra.gmra.mrb[36].mxu0 %vm177_vm2, %v1761_v32 }
0x130b   :  { %v1815_v55 = vpop.f32.mrb[36].mxu0 }
0x130c   :  { %1829 = vrot.lane.b32.xlu0 %v1815_v55, %s2460_s4  ;;  %v2251_v56 = vpop.f32.mrb[37].mxu0  ;;  %v2000_v59 = vmul.f32 -1.442695, %v1815_v55 }
0x130d   :  { %v1818_v57 = vpop.f32.mrb[38].mxu0 }
0x130e   :  { %v2252_v58 = vpop.f32.mrb[39].mxu0  ;;  %2424 = vpow2.f32 %v2000_v59 }
0x1318   :  { %v2425_v29 = vpop.eup %2424 }
0x1319   :  { %v1824_v60 = vadd.f32 1.0, %v2425_v29 }
0x131b   :  { %2426 = vrcp.f32 %v1824_v60 }
0x1325   :  { %v2427_v62 = vpop.eup %2426 }
0x1326   :  { %v1827_v1 = vmul.f32 %v2427_v62, %v1815_v55 }
0x137e   :  { %v1830_v2 = vpop.permute.xlu0 %1829 }
0x137f   :  { %v1832_v8 = vmul.f32 %v1830_v2, %v1827_v1 }
0x1381   :  { %v1833_v5 = vpack.c.bf16 %v1832_v8, %v1832_v8 }
0x1383   :  { %2262 = vmatmul.mubr.msk.bf16.vlgmr.msra.gmra.mrb[44].mxu1 %vm277_vm4, %v1833_v5 }
0x1456   :  { %v1903_v6 = vpop.f32.mrb[44].mxu1 }
0x1457   :  { %v1904_v7 = vadd.f32 %v1903_v6, %v1742_v39  ;;  %v2263_v61 = vpop.f32.mrb[45].mxu1 }
0x1458   :  { %v1906_v9 = vpop.f32.mrb[46].mxu1 }
0x1459   :  { %v2264_v10 = vpop.f32.mrb[47].mxu1  ;;  %v1910_v11 = vmul.f32 %v1904_v7, %v1904_v7 }
0x145b   :  { %v1911_v12 = vsel %vm177_vm2, %v1910_v11, 0.0 }
0x145c   :  { %1912 = vadd.xlane.f32.xlu0 %v1911_v12 }
0x14e9   :  { %v1913_v13 = vpop.xlane.xlu0 %1912 }
0x14ea   :  { %v1914_v14 = vmul.f32 0.03125, %v1913_v13 }
0x14ec   :  { %v1915_v15 = vadd.f32 1e-05, %v1914_v14 }
0x14ee   :  { %2428 = vrsqrt.f32 %v1915_v15 }
0x14f8   :  { %v2429_v16 = vpop.eup %2428 }
0x14f9   :  { %v1917_v18 = vmul.f32 %v2429_v16, %v1904_v7 }
0x14fb   :  { %v1924_v19 = vmul.f32 %v2006_v0, %v1917_v18 }
0x14fd   :  { %1925 = vst.msk [vmem:[#allocation2] sm:$0xff] %vm177_vm2, %v1924_v19 }
0x14fe   :  { %2441 = shalt.err (!%p2438_p4)
}
0x14ff   :  { %s2442_s0 = scalar_lea.hbm %s3037_s14, 128 }
0x1500   :  { %p2443_p5 = scmp.ne.s32.totalorder %s3037_s14, %s2442_s0  ;;  %p2446_p6 = scmp.lt.u32.totalorder %s2442_s0, %s3037_s14 }
0x1502   :  { %p2448_p7 = pnand %p2446_p6, %p2443_p5 }
0x1504   :  { %2451 = shalt.err (!%p2448_p7)
}
0x1505   :  { %1935 = dma.vmem_to_hbm [thread:$0]  %s1933_s17, 128, %s3037_s14, [#allocation3]  }
0x1506   :  { %2452 = dma.done.wait [#allocation3], 128  }
0x1507   :  { %2453 = vsyncadd [#allocation3], 4294967168 }
0x1508   :  { %1939 = vsyncpa [#allocation3], 1 }

</bundles_post_ra>
